<compile_context>
chip_gen: v7x
topology: tpu7x:2x2x1
jax: 0.10.0
libtpu: 0.0.40
codegen_flags: <defaults>
</compile_context>

<pallas_src>
import jax
import jax.numpy as jnp
from jax.experimental import pallas as pl
from jax.experimental.pallas import tpu as pltpu


def _pick_row_tile(Ho, Wo, *, max_pw=4096, th_cap=16):
    """Largest TH dividing Ho with TH*Wo <= max_pw, TH <= th_cap, and
    (R == 1 or TH*Wo % 128 == 0) so tiled output blocks stay lane-dense."""
    cands = [d for d in range(1, Ho + 1)
             if Ho % d == 0 and d <= th_cap and d * Wo <= max_pw
             and (d == Ho or (d * Wo) % 128 == 0)]
    return max(cands) if cands else Ho


def downsample_block_led(x_nchw, weight, bias, *, padding=1, compute_dtype=None):
    """weight: (Cout-Cin, Cin, 3, 3) PyTorch OIHW; bias: (Cout-Cin,).

    compute_dtype (e.g. jnp.bfloat16) casts the matmul operands / slabs; note
    that the pool half then sees compute_dtype-rounded inputs. Default (None)
    keeps everything in the input dtype (exact)."""
    N, Cin, H, W = x_nchw.shape
    Cc = weight.shape[0]                       # out_channels - in_channels
    Cout = Cc + Cin
    assert weight.shape == (Cc, Cin, 3, 3), "kernel_size=3 expected"
    assert padding == 1, "LEDNet uses padding=1 (conv/pool spatial dims must match)"
    assert H % 2 == 0 and W % 2 == 0, "even spatial dims required"
    Ho, Wo = H // 2, W // 2
    HhS, Ws = Ho + 1, Wo + 1                   # parity-slab spatial dims
    L = HhS * Ws                               # flattened slab spatial length

    TH = _pick_row_tile(Ho, Wo)                # output rows per grid step
    R = Ho // TH
    PW = TH * Wo                               # lanes per output block (no junk cols)
    K = 9 * Cin                                # stacked contraction depth

    cdt = x_nchw.dtype if compute_dtype is None else jnp.dtype(compute_dtype)
    out_dtype = x_nchw.dtype

    # ---- single fused wrapper pass: pad + space-to-depth (parity split) -----
    # slab[2a+b][cin, u, v] = xpad[cin, 2u+a, 2v+b]; every stride-2 conv tap and
    # every 2x2 pool candidate is then a unit-stride window of one slab.
    xp = jnp.pad(x_nchw, ((0, 0), (0, 0), (1, 1), (1, 1)))
    xs = xp.reshape(N, Cin, HhS, 2, Ws, 2)
    xs = jnp.transpose(xs, (0, 3, 5, 1, 2, 4))          # (N, 2, 2, Cin, HhS, Ws)
    slabs = xs.reshape(N, 4, Cin, L).astype(cdt)

    # weight OIHW -> (Cc, 9*Cin); K index = (dh*3 + dw)*Cin + c.
    w_flat = jnp.transpose(weight, (0, 2, 3, 1)).reshape(Cc, K).astype(cdt)
    b2 = bias.reshape(Cc, 1).astype(jnp.float32)

    def kernel(xs_ref, w_ref, b_ref, o_ref, scr_ref):
        # xs_ref : (1, 4, Cin, L)    parity slabs (VMEM-resident per image)
        # w_ref  : (Cc, 9*Cin)       stacked-K conv weights
        # b_ref  : (Cc, 1)           conv bias (f32)
        # o_ref  : (1, Cout, PW)     channel-major output, flat spatial on lanes
        # scr_ref: (9*Cin, PW)       in-VMEM im2col staging scratch
        row0 = 0 if R == 1 else pl.program_id(1) * TH

        # Stage every shifted tap view exactly once into the stacked-K scratch.
        for dh in range(3):
            a, qh = dh % 2, dh // 2
            for dw in range(3):
                b, qw = dw % 2, dw // 2
                t = dh * 3 + dw
                p = 2 * a + b
                for i in range(TH):
                    src = xs_ref[0, p, :, pl.ds((row0 + i + qh) * Ws + qw, Wo)]
                    scr_ref[t * Cin:(t + 1) * Cin, i * Wo:(i + 1) * Wo] = src

        # Conv: ONE full-depth matmul on the MXU, f32 accumulation.
        conv = jnp.dot(w_ref[...], scr_ref[...],
                       preferred_element_type=jnp.float32)
        conv = conv + b_ref[...]
        o_ref[0, 0:Cc, :] = jnp.maximum(conv, 0.0).astype(o_ref.dtype)

        # 2x2 max-pool: the 4 taps with dh,dw in {1,2} are exactly the pool
        # candidates and are already staged (aligned (Cin, PW) reads).
        pool = scr_ref[4 * Cin:5 * Cin, :]
        for t in (5, 7, 8):
            pool = jnp.maximum(pool, scr_ref[t * Cin:(t + 1) * Cin, :])
        o_ref[0, Cc:Cout, :] = jnp.maximum(pool, 0.0).astype(o_ref.dtype)

    # ---- VMEM budget: slab (double-buffered) + scratch + output blocks ------
    isz = jnp.dtype(cdt).itemsize
    osz = jnp.dtype(out_dtype).itemsize
    need = (2 * 4 * Cin * L * isz            # slab double-buffer
            + K * PW * isz                   # im2col scratch
            + 2 * Cout * PW * osz            # output double-buffer
            + 2 * Cc * K * isz + (2 << 20))  # weights + headroom
    vmem_limit = max(32 << 20, min(need * 5 // 4, 100 << 20))
    try:
        cap = pltpu.get_tpu_info().vmem_capacity_bytes
        vmem_limit = min(vmem_limit, cap * 3 // 4)
    except Exception:
        pass

    out_flat = pl.pallas_call(
        kernel,
        out_shape=jax.ShapeDtypeStruct((N, Cout, Ho * Wo), out_dtype),
        grid_spec=pltpu.PrefetchScalarGridSpec(
            num_scalar_prefetch=0,
            grid=(N, R),                     # r innermost: slabs reused across row tiles
            in_specs=[
                pl.BlockSpec((1, 4, Cin, L), lambda n, r: (n, 0, 0, 0)),
                pl.BlockSpec((Cc, K), lambda n, r: (0, 0)),
                pl.BlockSpec((Cc, 1), lambda n, r: (0, 0)),
            ],
            out_specs=pl.BlockSpec((1, Cout, PW), lambda n, r: (n, 0, r)),
            scratch_shapes=[pltpu.VMEM((K, PW), cdt)],
        ),
        compiler_params=pltpu.CompilerParams(
            dimension_semantics=("parallel", "parallel"),
            vmem_limit_bytes=int(vmem_limit),
        ),
    )(slabs, w_flat, b2)

    # Free split-last-dim reshape to NCHW (no extra HBM pass, no slice).
    return out_flat.reshape(N, Cout, Ho, Wo)


def _reference(x_nchw, weight, bias, padding=1):
    main = jax.lax.conv_general_dilated(
        x_nchw, weight, window_strides=(2, 2),
        padding=[(padding, padding), (padding, padding)],
        dimension_numbers=("NCHW", "OIHW", "NCHW"))
    main = main + bias[None, :, None, None]
    ext = jax.lax.reduce_window(
        x_nchw, -jnp.inf, jax.lax.max,
        window_dimensions=(1, 1, 2, 2), window_strides=(1, 1, 2, 2),
        padding="VALID")
    out = jnp.concatenate([main, ext], axis=1)
    return jnp.maximum(out, 0.0)


if __name__ == "__main__":
    def run_case(key, N, Cin, Cout, H, W):
        kx, kw, kb = jax.random.split(key, 3)
        Cc = Cout - Cin
        x = jax.random.normal(kx, (N, Cin, H, W), dtype=jnp.float32)
        w = 0.1 * jax.random.normal(kw, (Cc, Cin, 3, 3), dtype=jnp.float32)
        b = 0.05 * jax.random.normal(kb, (Cc,), dtype=jnp.float32)

        out = jax.block_until_ready(downsample_block_led(x, w, b, padding=1))
        ref = _reference(x, w, b, padding=1)
        assert out.shape == (N, Cout, H // 2, W // 2), out.shape
        err = float(jnp.max(jnp.abs(out - ref)))
        assert jnp.allclose(out, ref, rtol=1e-5, atol=1e-5), err

    k1, k2, k3 = jax.random.split(jax.random.PRNGKey(0), 3)
    run_case(k1, 2, 4, 8, 16, 16)   # primary shape (R == 1)
    run_case(k2, 1, 4, 8, 64, 16)   # exercises the row-tiled path (R == 2)
    run_case(k3, 1, 3, 8, 16, 16)   # Cin=3 / Cc=5 (unaligned channel counts)

    print("KERNEL_OK")
</pallas_src>

<mosaic_0001>
module attributes {stable_mosaic.version = 11 : i64} {
  func.func @kernel(%arg0: i32, %arg1: i32, %arg2: memref<1x4x4x81xf32, #tpu.memory_space<vmem>>, %arg3: memref<4x36xf32, #tpu.memory_space<vmem>>, %arg4: memref<4x1xf32, #tpu.memory_space<vmem>>, %arg5: memref<1x8x64xf32, #tpu.memory_space<vmem>>, %arg6: memref<36x64xf32, #tpu.memory_space<vmem>>) attributes {dimension_semantics = [#tpu.dimension_semantics<parallel>, #tpu.dimension_semantics<parallel>], iteration_bounds = array<i64: 2, 1>, scalar_prefetch = 0 : i64, scratch_operands = 1 : i64, tpu.core_type = #tpu.core_type<tc>, window_params = [{transform_indices = @transform_0, window_bounds = array<i64: 1, 4, 4, 81>}, {pipeline_mode = #tpu.pipeline_mode<synchronous>, transform_indices = @transform_1, window_bounds = array<i64: 4, 36>}, {pipeline_mode = #tpu.pipeline_mode<synchronous>, transform_indices = @transform_2, window_bounds = array<i64: 4, 1>}, {transform_indices = @transform_3, window_bounds = array<i64: 1, 8, 64>}]} {
    %c0 = arith.constant 0 : index
    %c0_0 = arith.constant 0 : index
    %c0_1 = arith.constant 0 : index
    %c0_2 = arith.constant 0 : index
    %0 = vector.load %arg2[%c0, %c0_0, %c0_1, %c0_2] : memref<1x4x4x81xf32, #tpu.memory_space<vmem>>, vector<1x1x4x8xf32>
    %1 = vector.shape_cast %0 : vector<1x1x4x8xf32> to vector<4x8xf32>
    %c0_3 = arith.constant 0 : index
    %c0_4 = arith.constant 0 : index
    %2 = vector.load %arg6[%c0_3, %c0_4] : memref<36x64xf32, #tpu.memory_space<vmem>>, vector<4x8xf32>
    tpu.vector_store %arg6[%c0_3, %c0_4], %1 {strides = array<i32>} : memref<36x64xf32, #tpu.memory_space<vmem>>, vector<4x8xf32>,
    %c0_5 = arith.constant 0 : index
    %c0_6 = arith.constant 0 : index
    %c0_7 = arith.constant 0 : index
    %c9 = arith.constant 9 : index
    %3 = vector.load %arg2[%c0_5, %c0_6, %c0_7, %c9] : memref<1x4x4x81xf32, #tpu.memory_space<vmem>>, vector<1x1x4x8xf32>
    %4 = vector.shape_cast %3 : vector<1x1x4x8xf32> to vector<4x8xf32>
    %c0_8 = arith.constant 0 : index
    %c8 = arith.constant 8 : index
    %5 = vector.load %arg6[%c0_8, %c8] : memref<36x64xf32, #tpu.memory_space<vmem>>, vector<4x8xf32>
    tpu.vector_store %arg6[%c0_8, %c8], %4 {strides = array<i32>} : memref<36x64xf32, #tpu.memory_space<vmem>>, vector<4x8xf32>,
    %c0_9 = arith.constant 0 : index
    %c0_10 = arith.constant 0 : index
    %c0_11 = arith.constant 0 : index
    %c18 = arith.constant 18 : index
    %6 = vector.load %arg2[%c0_9, %c0_10, %c0_11, %c18] : memref<1x4x4x81xf32, #tpu.memory_space<vmem>>, vector<1x1x4x8xf32>
    %7 = vector.shape_cast %6 : vector<1x1x4x8xf32> to vector<4x8xf32>
    %c0_12 = arith.constant 0 : index
    %c16 = arith.constant 16 : index
    %8 = vector.load %arg6[%c0_12, %c16] : memref<36x64xf32, #tpu.memory_space<vmem>>, vector<4x8xf32>
    tpu.vector_store %arg6[%c0_12, %c16], %7 {strides = array<i32>} : memref<36x64xf32, #tpu.memory_space<vmem>>, vector<4x8xf32>,
    %c0_13 = arith.constant 0 : index
    %c0_14 = arith.constant 0 : index
    %c0_15 = arith.constant 0 : index
    %c27 = arith.constant 27 : index
    %9 = vector.load %arg2[%c0_13, %c0_14, %c0_15, %c27] : memref<1x4x4x81xf32, #tpu.memory_space<vmem>>, vector<1x1x4x8xf32>
    %10 = vector.shape_cast %9 : vector<1x1x4x8xf32> to vector<4x8xf32>
    %c0_16 = arith.constant 0 : index
    %c24 = arith.constant 24 : index
    %11 = vector.load %arg6[%c0_16, %c24] : memref<36x64xf32, #tpu.memory_space<vmem>>, vector<4x8xf32>
    tpu.vector_store %arg6[%c0_16, %c24], %10 {strides = array<i32>} : memref<36x64xf32, #tpu.memory_space<vmem>>, vector<4x8xf32>,
    %c0_17 = arith.constant 0 : index
    %c0_18 = arith.constant 0 : index
    %c0_19 = arith.constant 0 : index
    %c36 = arith.constant 36 : index
    %12 = vector.load %arg2[%c0_17, %c0_18, %c0_19, %c36] : memref<1x4x4x81xf32, #tpu.memory_space<vmem>>, vector<1x1x4x8xf32>
    %13 = vector.shape_cast %12 : vector<1x1x4x8xf32> to vector<4x8xf32>
    %c0_20 = arith.constant 0 : index
    %c32 = arith.constant 32 : index
    %14 = vector.load %arg6[%c0_20, %c32] : memref<36x64xf32, #tpu.memory_space<vmem>>, vector<4x8xf32>
    tpu.vector_store %arg6[%c0_20, %c32], %13 {strides = array<i32>} : memref<36x64xf32, #tpu.memory_space<vmem>>, vector<4x8xf32>,
    %c0_21 = arith.constant 0 : index
    %c0_22 = arith.constant 0 : index
    %c0_23 = arith.constant 0 : index
    %c45 = arith.constant 45 : index
    %15 = vector.load %arg2[%c0_21, %c0_22, %c0_23, %c45] : memref<1x4x4x81xf32, #tpu.memory_space<vmem>>, vector<1x1x4x8xf32>
    %16 = vector.shape_cast %15 : vector<1x1x4x8xf32> to vector<4x8xf32>
    %c0_24 = arith.constant 0 : index
    %c40 = arith.constant 40 : index
    %17 = vector.load %arg6[%c0_24, %c40] : memref<36x64xf32, #tpu.memory_space<vmem>>, vector<4x8xf32>
    tpu.vector_store %arg6[%c0_24, %c40], %16 {strides = array<i32>} : memref<36x64xf32, #tpu.memory_space<vmem>>, vector<4x8xf32>,
    %c0_25 = arith.constant 0 : index
    %c0_26 = arith.constant 0 : index
    %c0_27 = arith.constant 0 : index
    %c54 = arith.constant 54 : index
    %18 = vector.load %arg2[%c0_25, %c0_26, %c0_27, %c54] : memref<1x4x4x81xf32, #tpu.memory_space<vmem>>, vector<1x1x4x8xf32>
    %19 = vector.shape_cast %18 : vector<1x1x4x8xf32> to vector<4x8xf32>
    %c0_28 = arith.constant 0 : index
    %c48 = arith.constant 48 : index
    %20 = vector.load %arg6[%c0_28, %c48] : memref<36x64xf32, #tpu.memory_space<vmem>>, vector<4x8xf32>
    tpu.vector_store %arg6[%c0_28, %c48], %19 {strides = array<i32>} : memref<36x64xf32, #tpu.memory_space<vmem>>, vector<4x8xf32>,
    %c0_29 = arith.constant 0 : index
    %c0_30 = arith.constant 0 : index
    %c0_31 = arith.constant 0 : index
    %c63 = arith.constant 63 : index
    %21 = vector.load %arg2[%c0_29, %c0_30, %c0_31, %c63] : memref<1x4x4x81xf32, #tpu.memory_space<vmem>>, vector<1x1x4x8xf32>
    %22 = vector.shape_cast %21 : vector<1x1x4x8xf32> to vector<4x8xf32>
    %c0_32 = arith.constant 0 : index
    %c56 = arith.constant 56 : index
    %23 = vector.load %arg6[%c0_32, %c56] : memref<36x64xf32, #tpu.memory_space<vmem>>, vector<4x8xf32>
    tpu.vector_store %arg6[%c0_32, %c56], %22 {strides = array<i32>} : memref<36x64xf32, #tpu.memory_space<vmem>>, vector<4x8xf32>,
    %c0_33 = arith.constant 0 : index
    %c1 = arith.constant 1 : index
    %c0_34 = arith.constant 0 : index
    %c0_35 = arith.constant 0 : index
    %24 = vector.load %arg2[%c0_33, %c1, %c0_34, %c0_35] : memref<1x4x4x81xf32, #tpu.memory_space<vmem>>, vector<1x1x4x8xf32>
    %25 = vector.shape_cast %24 : vector<1x1x4x8xf32> to vector<4x8xf32>
    %c4 = arith.constant 4 : index
    %c0_36 = arith.constant 0 : index
    %26 = vector.load %arg6[%c4, %c0_36] : memref<36x64xf32, #tpu.memory_space<vmem>>, vector<4x8xf32>
    tpu.vector_store %arg6[%c4, %c0_36], %25 {strides = array<i32>} : memref<36x64xf32, #tpu.memory_space<vmem>>, vector<4x8xf32>,
    %c0_37 = arith.constant 0 : index
    %c1_38 = arith.constant 1 : index
    %c0_39 = arith.constant 0 : index
    %c9_40 = arith.constant 9 : index
    %27 = vector.load %arg2[%c0_37, %c1_38, %c0_39, %c9_40] : memref<1x4x4x81xf32, #tpu.memory_space<vmem>>, vector<1x1x4x8xf32>
    %28 = vector.shape_cast %27 : vector<1x1x4x8xf32> to vector<4x8xf32>
    %c4_41 = arith.constant 4 : index
    %c8_42 = arith.constant 8 : index
    %29 = vector.load %arg6[%c4_41, %c8_42] : memref<36x64xf32, #tpu.memory_space<vmem>>, vector<4x8xf32>
    tpu.vector_store %arg6[%c4_41, %c8_42], %28 {strides = array<i32>} : memref<36x64xf32, #tpu.memory_space<vmem>>, vector<4x8xf32>,
    %c0_43 = arith.constant 0 : index
    %c1_44 = arith.constant 1 : index
    %c0_45 = arith.constant 0 : index
    %c18_46 = arith.constant 18 : index
    %30 = vector.load %arg2[%c0_43, %c1_44, %c0_45, %c18_46] : memref<1x4x4x81xf32, #tpu.memory_space<vmem>>, vector<1x1x4x8xf32>
    %31 = vector.shape_cast %30 : vector<1x1x4x8xf32> to vector<4x8xf32>
    %c4_47 = arith.constant 4 : index
    %c16_48 = arith.constant 16 : index
    %32 = vector.load %arg6[%c4_47, %c16_48] : memref<36x64xf32, #tpu.memory_space<vmem>>, vector<4x8xf32>
    tpu.vector_store %arg6[%c4_47, %c16_48], %31 {strides = array<i32>} : memref<36x64xf32, #tpu.memory_space<vmem>>, vector<4x8xf32>,
    %c0_49 = arith.constant 0 : index
    %c1_50 = arith.constant 1 : index
    %c0_51 = arith.constant 0 : index
    %c27_52 = arith.constant 27 : index
    %33 = vector.load %arg2[%c0_49, %c1_50, %c0_51, %c27_52] : memref<1x4x4x81xf32, #tpu.memory_space<vmem>>, vector<1x1x4x8xf32>
    %34 = vector.shape_cast %33 : vector<1x1x4x8xf32> to vector<4x8xf32>
    %c4_53 = arith.constant 4 : index
    %c24_54 = arith.constant 24 : index
    %35 = vector.load %arg6[%c4_53, %c24_54] : memref<36x64xf32, #tpu.memory_space<vmem>>, vector<4x8xf32>
    tpu.vector_store %arg6[%c4_53, %c24_54], %34 {strides = array<i32>} : memref<36x64xf32, #tpu.memory_space<vmem>>, vector<4x8xf32>,
    %c0_55 = arith.constant 0 : index
    %c1_56 = arith.constant 1 : index
    %c0_57 = arith.constant 0 : index
    %c36_58 = arith.constant 36 : index
    %36 = vector.load %arg2[%c0_55, %c1_56, %c0_57, %c36_58] : memref<1x4x4x81xf32, #tpu.memory_space<vmem>>, vector<1x1x4x8xf32>
    %37 = vector.shape_cast %36 : vector<1x1x4x8xf32> to vector<4x8xf32>
    %c4_59 = arith.constant 4 : index
    %c32_60 = arith.constant 32 : index
    %38 = vector.load %arg6[%c4_59, %c32_60] : memref<36x64xf32, #tpu.memory_space<vmem>>, vector<4x8xf32>
    tpu.vector_store %arg6[%c4_59, %c32_60], %37 {strides = array<i32>} : memref<36x64xf32, #tpu.memory_space<vmem>>, vector<4x8xf32>,
    %c0_61 = arith.constant 0 : index
    %c1_62 = arith.constant 1 : index
    %c0_63 = arith.constant 0 : index
    %c45_64 = arith.constant 45 : index
    %39 = vector.load %arg2[%c0_61, %c1_62, %c0_63, %c45_64] : memref<1x4x4x81xf32, #tpu.memory_space<vmem>>, vector<1x1x4x8xf32>
    %40 = vector.shape_cast %39 : vector<1x1x4x8xf32> to vector<4x8xf32>
    %c4_65 = arith.constant 4 : index
    %c40_66 = arith.constant 40 : index
    %41 = vector.load %arg6[%c4_65, %c40_66] : memref<36x64xf32, #tpu.memory_space<vmem>>, vector<4x8xf32>
    tpu.vector_store %arg6[%c4_65, %c40_66], %40 {strides = array<i32>} : memref<36x64xf32, #tpu.memory_space<vmem>>, vector<4x8xf32>,
    %c0_67 = arith.constant 0 : index
    %c1_68 = arith.constant 1 : index
    %c0_69 = arith.constant 0 : index
    %c54_70 = arith.constant 54 : index
    %42 = vector.load %arg2[%c0_67, %c1_68, %c0_69, %c54_70] : memref<1x4x4x81xf32, #tpu.memory_space<vmem>>, vector<1x1x4x8xf32>
    %43 = vector.shape_cast %42 : vector<1x1x4x8xf32> to vector<4x8xf32>
    %c4_71 = arith.constant 4 : index
    %c48_72 = arith.constant 48 : index
    %44 = vector.load %arg6[%c4_71, %c48_72] : memref<36x64xf32, #tpu.memory_space<vmem>>, vector<4x8xf32>
    tpu.vector_store %arg6[%c4_71, %c48_72], %43 {strides = array<i32>} : memref<36x64xf32, #tpu.memory_space<vmem>>, vector<4x8xf32>,
    %c0_73 = arith.constant 0 : index
    %c1_74 = arith.constant 1 : index
    %c0_75 = arith.constant 0 : index
    %c63_76 = arith.constant 63 : index
    %45 = vector.load %arg2[%c0_73, %c1_74, %c0_75, %c63_76] : memref<1x4x4x81xf32, #tpu.memory_space<vmem>>, vector<1x1x4x8xf32>
    %46 = vector.shape_cast %45 : vector<1x1x4x8xf32> to vector<4x8xf32>
    %c4_77 = arith.constant 4 : index
    %c56_78 = arith.constant 56 : index
    %47 = vector.load %arg6[%c4_77, %c56_78] : memref<36x64xf32, #tpu.memory_space<vmem>>, vector<4x8xf32>
    tpu.vector_store %arg6[%c4_77, %c56_78], %46 {strides = array<i32>} : memref<36x64xf32, #tpu.memory_space<vmem>>, vector<4x8xf32>,
    %c0_79 = arith.constant 0 : index
    %c0_80 = arith.constant 0 : index
    %c0_81 = arith.constant 0 : index
    %c1_82 = arith.constant 1 : index
    %48 = vector.load %arg2[%c0_79, %c0_80, %c0_81, %c1_82] : memref<1x4x4x81xf32, #tpu.memory_space<vmem>>, vector<1x1x4x8xf32>
    %49 = vector.shape_cast %48 : vector<1x1x4x8xf32> to vector<4x8xf32>
    %c8_83 = arith.constant 8 : index
    %c0_84 = arith.constant 0 : index
    %50 = vector.load %arg6[%c8_83, %c0_84] : memref<36x64xf32, #tpu.memory_space<vmem>>, vector<4x8xf32>
    tpu.vector_store %arg6[%c8_83, %c0_84], %49 {strides = array<i32>} : memref<36x64xf32, #tpu.memory_space<vmem>>, vector<4x8xf32>,
    %c0_85 = arith.constant 0 : index
    %c0_86 = arith.constant 0 : index
    %c0_87 = arith.constant 0 : index
    %c10 = arith.constant 10 : index
    %51 = vector.load %arg2[%c0_85, %c0_86, %c0_87, %c10] : memref<1x4x4x81xf32, #tpu.memory_space<vmem>>, vector<1x1x4x8xf32>
    %52 = vector.shape_cast %51 : vector<1x1x4x8xf32> to vector<4x8xf32>
    %c8_88 = arith.constant 8 : index
    %c8_89 = arith.constant 8 : index
    %53 = vector.load %arg6[%c8_88, %c8_89] : memref<36x64xf32, #tpu.memory_space<vmem>>, vector<4x8xf32>
    tpu.vector_store %arg6[%c8_88, %c8_89], %52 {strides = array<i32>} : memref<36x64xf32, #tpu.memory_space<vmem>>, vector<4x8xf32>,
    %c0_90 = arith.constant 0 : index
    %c0_91 = arith.constant 0 : index
    %c0_92 = arith.constant 0 : index
    %c19 = arith.constant 19 : index
    %54 = vector.load %arg2[%c0_90, %c0_91, %c0_92, %c19] : memref<1x4x4x81xf32, #tpu.memory_space<vmem>>, vector<1x1x4x8xf32>
    %55 = vector.shape_cast %54 : vector<1x1x4x8xf32> to vector<4x8xf32>
    %c8_93 = arith.constant 8 : index
    %c16_94 = arith.constant 16 : index
    %56 = vector.load %arg6[%c8_93, %c16_94] : memref<36x64xf32, #tpu.memory_space<vmem>>, vector<4x8xf32>
    tpu.vector_store %arg6[%c8_93, %c16_94], %55 {strides = array<i32>} : memref<36x64xf32, #tpu.memory_space<vmem>>, vector<4x8xf32>,
    %c0_95 = arith.constant 0 : index
    %c0_96 = arith.constant 0 : index
    %c0_97 = arith.constant 0 : index
    %c28 = arith.constant 28 : index
    %57 = vector.load %arg2[%c0_95, %c0_96, %c0_97, %c28] : memref<1x4x4x81xf32, #tpu.memory_space<vmem>>, vector<1x1x4x8xf32>
    %58 = vector.shape_cast %57 : vector<1x1x4x8xf32> to vector<4x8xf32>
    %c8_98 = arith.constant 8 : index
    %c24_99 = arith.constant 24 : index
    %59 = vector.load %arg6[%c8_98, %c24_99] : memref<36x64xf32, #tpu.memory_space<vmem>>, vector<4x8xf32>
    tpu.vector_store %arg6[%c8_98, %c24_99], %58 {strides = array<i32>} : memref<36x64xf32, #tpu.memory_space<vmem>>, vector<4x8xf32>,
    %c0_100 = arith.constant 0 : index
    %c0_101 = arith.constant 0 : index
    %c0_102 = arith.constant 0 : index
    %c37 = arith.constant 37 : index
    %60 = vector.load %arg2[%c0_100, %c0_101, %c0_102, %c37] : memref<1x4x4x81xf32, #tpu.memory_space<vmem>>, vector<1x1x4x8xf32>
    %61 = vector.shape_cast %60 : vector<1x1x4x8xf32> to vector<4x8xf32>
    %c8_103 = arith.constant 8 : index
    %c32_104 = arith.constant 32 : index
    %62 = vector.load %arg6[%c8_103, %c32_104] : memref<36x64xf32, #tpu.memory_space<vmem>>, vector<4x8xf32>
    tpu.vector_store %arg6[%c8_103, %c32_104], %61 {strides = array<i32>} : memref<36x64xf32, #tpu.memory_space<vmem>>, vector<4x8xf32>,
    %c0_105 = arith.constant 0 : index
    %c0_106 = arith.constant 0 : index
    %c0_107 = arith.constant 0 : index
    %c46 = arith.constant 46 : index
    %63 = vector.load %arg2[%c0_105, %c0_106, %c0_107, %c46] : memref<1x4x4x81xf32, #tpu.memory_space<vmem>>, vector<1x1x4x8xf32>
    %64 = vector.shape_cast %63 : vector<1x1x4x8xf32> to vector<4x8xf32>
    %c8_108 = arith.constant 8 : index
    %c40_109 = arith.constant 40 : index
    %65 = vector.load %arg6[%c8_108, %c40_109] : memref<36x64xf32, #tpu.memory_space<vmem>>, vector<4x8xf32>
    tpu.vector_store %arg6[%c8_108, %c40_109], %64 {strides = array<i32>} : memref<36x64xf32, #tpu.memory_space<vmem>>, vector<4x8xf32>,
    %c0_110 = arith.constant 0 : index
    %c0_111 = arith.constant 0 : index
    %c0_112 = arith.constant 0 : index
    %c55 = arith.constant 55 : index
    %66 = vector.load %arg2[%c0_110, %c0_111, %c0_112, %c55] : memref<1x4x4x81xf32, #tpu.memory_space<vmem>>, vector<1x1x4x8xf32>
    %67 = vector.shape_cast %66 : vector<1x1x4x8xf32> to vector<4x8xf32>
    %c8_113 = arith.constant 8 : index
    %c48_114 = arith.constant 48 : index
    %68 = vector.load %arg6[%c8_113, %c48_114] : memref<36x64xf32, #tpu.memory_space<vmem>>, vector<4x8xf32>
    tpu.vector_store %arg6[%c8_113, %c48_114], %67 {strides = array<i32>} : memref<36x64xf32, #tpu.memory_space<vmem>>, vector<4x8xf32>,
    %c0_115 = arith.constant 0 : index
    %c0_116 = arith.constant 0 : index
    %c0_117 = arith.constant 0 : index
    %c64 = arith.constant 64 : index
    %69 = vector.load %arg2[%c0_115, %c0_116, %c0_117, %c64] : memref<1x4x4x81xf32, #tpu.memory_space<vmem>>, vector<1x1x4x8xf32>
    %70 = vector.shape_cast %69 : vector<1x1x4x8xf32> to vector<4x8xf32>
    %c8_118 = arith.constant 8 : index
    %c56_119 = arith.constant 56 : index
    %71 = vector.load %arg6[%c8_118, %c56_119] : memref<36x64xf32, #tpu.memory_space<vmem>>, vector<4x8xf32>
    tpu.vector_store %arg6[%c8_118, %c56_119], %70 {strides = array<i32>} : memref<36x64xf32, #tpu.memory_space<vmem>>, vector<4x8xf32>,
    %c0_120 = arith.constant 0 : index
    %c2 = arith.constant 2 : index
    %c0_121 = arith.constant 0 : index
    %c0_122 = arith.constant 0 : index
    %72 = vector.load %arg2[%c0_120, %c2, %c0_121, %c0_122] : memref<1x4x4x81xf32, #tpu.memory_space<vmem>>, vector<1x1x4x8xf32>
    %73 = vector.shape_cast %72 : vector<1x1x4x8xf32> to vector<4x8xf32>
    %c12 = arith.constant 12 : index
    %c0_123 = arith.constant 0 : index
    %74 = vector.load %arg6[%c12, %c0_123] : memref<36x64xf32, #tpu.memory_space<vmem>>, vector<4x8xf32>
    tpu.vector_store %arg6[%c12, %c0_123], %73 {strides = array<i32>} : memref<36x64xf32, #tpu.memory_space<vmem>>, vector<4x8xf32>,
    %c0_124 = arith.constant 0 : index
    %c2_125 = arith.constant 2 : index
    %c0_126 = arith.constant 0 : index
    %c9_127 = arith.constant 9 : index
    %75 = vector.load %arg2[%c0_124, %c2_125, %c0_126, %c9_127] : memref<1x4x4x81xf32, #tpu.memory_space<vmem>>, vector<1x1x4x8xf32>
    %76 = vector.shape_cast %75 : vector<1x1x4x8xf32> to vector<4x8xf32>
    %c12_128 = arith.constant 12 : index
    %c8_129 = arith.constant 8 : index
    %77 = vector.load %arg6[%c12_128, %c8_129] : memref<36x64xf32, #tpu.memory_space<vmem>>, vector<4x8xf32>
    tpu.vector_store %arg6[%c12_128, %c8_129], %76 {strides = array<i32>} : memref<36x64xf32, #tpu.memory_space<vmem>>, vector<4x8xf32>,
    %c0_130 = arith.constant 0 : index
    %c2_131 = arith.constant 2 : index
    %c0_132 = arith.constant 0 : index
    %c18_133 = arith.constant 18 : index
    %78 = vector.load %arg2[%c0_130, %c2_131, %c0_132, %c18_133] : memref<1x4x4x81xf32, #tpu.memory_space<vmem>>, vector<1x1x4x8xf32>
    %79 = vector.shape_cast %78 : vector<1x1x4x8xf32> to vector<4x8xf32>
    %c12_134 = arith.constant 12 : index
    %c16_135 = arith.constant 16 : index
    %80 = vector.load %arg6[%c12_134, %c16_135] : memref<36x64xf32, #tpu.memory_space<vmem>>, vector<4x8xf32>
    tpu.vector_store %arg6[%c12_134, %c16_135], %79 {strides = array<i32>} : memref<36x64xf32, #tpu.memory_space<vmem>>, vector<4x8xf32>,
    %c0_136 = arith.constant 0 : index
    %c2_137 = arith.constant 2 : index
    %c0_138 = arith.constant 0 : index
    %c27_139 = arith.constant 27 : index
    %81 = vector.load %arg2[%c0_136, %c2_137, %c0_138, %c27_139] : memref<1x4x4x81xf32, #tpu.memory_space<vmem>>, vector<1x1x4x8xf32>
    %82 = vector.shape_cast %81 : vector<1x1x4x8xf32> to vector<4x8xf32>
    %c12_140 = arith.constant 12 : index
    %c24_141 = arith.constant 24 : index
    %83 = vector.load %arg6[%c12_140, %c24_141] : memref<36x64xf32, #tpu.memory_space<vmem>>, vector<4x8xf32>
    tpu.vector_store %arg6[%c12_140, %c24_141], %82 {strides = array<i32>} : memref<36x64xf32, #tpu.memory_space<vmem>>, vector<4x8xf32>,
    %c0_142 = arith.constant 0 : index
    %c2_143 = arith.constant 2 : index
    %c0_144 = arith.constant 0 : index
    %c36_145 = arith.constant 36 : index
    %84 = vector.load %arg2[%c0_142, %c2_143, %c0_144, %c36_145] : memref<1x4x4x81xf32, #tpu.memory_space<vmem>>, vector<1x1x4x8xf32>
    %85 = vector.shape_cast %84 : vector<1x1x4x8xf32> to vector<4x8xf32>
    %c12_146 = arith.constant 12 : index
    %c32_147 = arith.constant 32 : index
    %86 = vector.load %arg6[%c12_146, %c32_147] : memref<36x64xf32, #tpu.memory_space<vmem>>, vector<4x8xf32>
    tpu.vector_store %arg6[%c12_146, %c32_147], %85 {strides = array<i32>} : memref<36x64xf32, #tpu.memory_space<vmem>>, vector<4x8xf32>,
    %c0_148 = arith.constant 0 : index
    %c2_149 = arith.constant 2 : index
    %c0_150 = arith.constant 0 : index
    %c45_151 = arith.constant 45 : index
    %87 = vector.load %arg2[%c0_148, %c2_149, %c0_150, %c45_151] : memref<1x4x4x81xf32, #tpu.memory_space<vmem>>, vector<1x1x4x8xf32>
    %88 = vector.shape_cast %87 : vector<1x1x4x8xf32> to vector<4x8xf32>
    %c12_152 = arith.constant 12 : index
    %c40_153 = arith.constant 40 : index
    %89 = vector.load %arg6[%c12_152, %c40_153] : memref<36x64xf32, #tpu.memory_space<vmem>>, vector<4x8xf32>
    tpu.vector_store %arg6[%c12_152, %c40_153], %88 {strides = array<i32>} : memref<36x64xf32, #tpu.memory_space<vmem>>, vector<4x8xf32>,
    %c0_154 = arith.constant 0 : index
    %c2_155 = arith.constant 2 : index
    %c0_156 = arith.constant 0 : index
    %c54_157 = arith.constant 54 : index
    %90 = vector.load %arg2[%c0_154, %c2_155, %c0_156, %c54_157] : memref<1x4x4x81xf32, #tpu.memory_space<vmem>>, vector<1x1x4x8xf32>
    %91 = vector.shape_cast %90 : vector<1x1x4x8xf32> to vector<4x8xf32>
    %c12_158 = arith.constant 12 : index
    %c48_159 = arith.constant 48 : index
    %92 = vector.load %arg6[%c12_158, %c48_159] : memref<36x64xf32, #tpu.memory_space<vmem>>, vector<4x8xf32>
    tpu.vector_store %arg6[%c12_158, %c48_159], %91 {strides = array<i32>} : memref<36x64xf32, #tpu.memory_space<vmem>>, vector<4x8xf32>,
    %c0_160 = arith.constant 0 : index
    %c2_161 = arith.constant 2 : index
    %c0_162 = arith.constant 0 : index
    %c63_163 = arith.constant 63 : index
    %93 = vector.load %arg2[%c0_160, %c2_161, %c0_162, %c63_163] : memref<1x4x4x81xf32, #tpu.memory_space<vmem>>, vector<1x1x4x8xf32>
    %94 = vector.shape_cast %93 : vector<1x1x4x8xf32> to vector<4x8xf32>
    %c12_164 = arith.constant 12 : index
    %c56_165 = arith.constant 56 : index
    %95 = vector.load %arg6[%c12_164, %c56_165] : memref<36x64xf32, #tpu.memory_space<vmem>>, vector<4x8xf32>
    tpu.vector_store %arg6[%c12_164, %c56_165], %94 {strides = array<i32>} : memref<36x64xf32, #tpu.memory_space<vmem>>, vector<4x8xf32>,
    %c0_166 = arith.constant 0 : index
    %c3 = arith.constant 3 : index
    %c0_167 = arith.constant 0 : index
    %c0_168 = arith.constant 0 : index
    %96 = vector.load %arg2[%c0_166, %c3, %c0_167, %c0_168] : memref<1x4x4x81xf32, #tpu.memory_space<vmem>>, vector<1x1x4x8xf32>
    %97 = vector.shape_cast %96 : vector<1x1x4x8xf32> to vector<4x8xf32>
    %c16_169 = arith.constant 16 : index
    %c0_170 = arith.constant 0 : index
    %98 = vector.load %arg6[%c16_169, %c0_170] : memref<36x64xf32, #tpu.memory_space<vmem>>, vector<4x8xf32>
    tpu.vector_store %arg6[%c16_169, %c0_170], %97 {strides = array<i32>} : memref<36x64xf32, #tpu.memory_space<vmem>>, vector<4x8xf32>,
    %c0_171 = arith.constant 0 : index
    %c3_172 = arith.constant 3 : index
    %c0_173 = arith.constant 0 : index
    %c9_174 = arith.constant 9 : index
    %99 = vector.load %arg2[%c0_171, %c3_172, %c0_173, %c9_174] : memref<1x4x4x81xf32, #tpu.memory_space<vmem>>, vector<1x1x4x8xf32>
    %100 = vector.shape_cast %99 : vector<1x1x4x8xf32> to vector<4x8xf32>
    %c16_175 = arith.constant 16 : index
    %c8_176 = arith.constant 8 : index
    %101 = vector.load %arg6[%c16_175, %c8_176] : memref<36x64xf32, #tpu.memory_space<vmem>>, vector<4x8xf32>
    tpu.vector_store %arg6[%c16_175, %c8_176], %100 {strides = array<i32>} : memref<36x64xf32, #tpu.memory_space<vmem>>, vector<4x8xf32>,
    %c0_177 = arith.constant 0 : index
    %c3_178 = arith.constant 3 : index
    %c0_179 = arith.constant 0 : index
    %c18_180 = arith.constant 18 : index
    %102 = vector.load %arg2[%c0_177, %c3_178, %c0_179, %c18_180] : memref<1x4x4x81xf32, #tpu.memory_space<vmem>>, vector<1x1x4x8xf32>
    %103 = vector.shape_cast %102 : vector<1x1x4x8xf32> to vector<4x8xf32>
    %c16_181 = arith.constant 16 : index
    %c16_182 = arith.constant 16 : index
    %104 = vector.load %arg6[%c16_181, %c16_182] : memref<36x64xf32, #tpu.memory_space<vmem>>, vector<4x8xf32>
    tpu.vector_store %arg6[%c16_181, %c16_182], %103 {strides = array<i32>} : memref<36x64xf32, #tpu.memory_space<vmem>>, vector<4x8xf32>,
    %c0_183 = arith.constant 0 : index
    %c3_184 = arith.constant 3 : index
    %c0_185 = arith.constant 0 : index
    %c27_186 = arith.constant 27 : index
    %105 = vector.load %arg2[%c0_183, %c3_184, %c0_185, %c27_186] : memref<1x4x4x81xf32, #tpu.memory_space<vmem>>, vector<1x1x4x8xf32>
    %106 = vector.shape_cast %105 : vector<1x1x4x8xf32> to vector<4x8xf32>
    %c16_187 = arith.constant 16 : index
    %c24_188 = arith.constant 24 : index
    %107 = vector.load %arg6[%c16_187, %c24_188] : memref<36x64xf32, #tpu.memory_space<vmem>>, vector<4x8xf32>
    tpu.vector_store %arg6[%c16_187, %c24_188], %106 {strides = array<i32>} : memref<36x64xf32, #tpu.memory_space<vmem>>, vector<4x8xf32>,
    %c0_189 = arith.constant 0 : index
    %c3_190 = arith.constant 3 : index
    %c0_191 = arith.constant 0 : index
    %c36_192 = arith.constant 36 : index
    %108 = vector.load %arg2[%c0_189, %c3_190, %c0_191, %c36_192] : memref<1x4x4x81xf32, #tpu.memory_space<vmem>>, vector<1x1x4x8xf32>
    %109 = vector.shape_cast %108 : vector<1x1x4x8xf32> to vector<4x8xf32>
    %c16_193 = arith.constant 16 : index
    %c32_194 = arith.constant 32 : index
    %110 = vector.load %arg6[%c16_193, %c32_194] : memref<36x64xf32, #tpu.memory_space<vmem>>, vector<4x8xf32>
    tpu.vector_store %arg6[%c16_193, %c32_194], %109 {strides = array<i32>} : memref<36x64xf32, #tpu.memory_space<vmem>>, vector<4x8xf32>,
    %c0_195 = arith.constant 0 : index
    %c3_196 = arith.constant 3 : index
    %c0_197 = arith.constant 0 : index
    %c45_198 = arith.constant 45 : index
    %111 = vector.load %arg2[%c0_195, %c3_196, %c0_197, %c45_198] : memref<1x4x4x81xf32, #tpu.memory_space<vmem>>, vector<1x1x4x8xf32>
    %112 = vector.shape_cast %111 : vector<1x1x4x8xf32> to vector<4x8xf32>
    %c16_199 = arith.constant 16 : index
    %c40_200 = arith.constant 40 : index
    %113 = vector.load %arg6[%c16_199, %c40_200] : memref<36x64xf32, #tpu.memory_space<vmem>>, vector<4x8xf32>
    tpu.vector_store %arg6[%c16_199, %c40_200], %112 {strides = array<i32>} : memref<36x64xf32, #tpu.memory_space<vmem>>, vector<4x8xf32>,
    %c0_201 = arith.constant 0 : index
    %c3_202 = arith.constant 3 : index
    %c0_203 = arith.constant 0 : index
    %c54_204 = arith.constant 54 : index
    %114 = vector.load %arg2[%c0_201, %c3_202, %c0_203, %c54_204] : memref<1x4x4x81xf32, #tpu.memory_space<vmem>>, vector<1x1x4x8xf32>
    %115 = vector.shape_cast %114 : vector<1x1x4x8xf32> to vector<4x8xf32>
    %c16_205 = arith.constant 16 : index
    %c48_206 = arith.constant 48 : index
    %116 = vector.load %arg6[%c16_205, %c48_206] : memref<36x64xf32, #tpu.memory_space<vmem>>, vector<4x8xf32>
    tpu.vector_store %arg6[%c16_205, %c48_206], %115 {strides = array<i32>} : memref<36x64xf32, #tpu.memory_space<vmem>>, vector<4x8xf32>,
    %c0_207 = arith.constant 0 : index
    %c3_208 = arith.constant 3 : index
    %c0_209 = arith.constant 0 : index
    %c63_210 = arith.constant 63 : index
    %117 = vector.load %arg2[%c0_207, %c3_208, %c0_209, %c63_210] : memref<1x4x4x81xf32, #tpu.memory_space<vmem>>, vector<1x1x4x8xf32>
    %118 = vector.shape_cast %117 : vector<1x1x4x8xf32> to vector<4x8xf32>
    %c16_211 = arith.constant 16 : index
    %c56_212 = arith.constant 56 : index
    %119 = vector.load %arg6[%c16_211, %c56_212] : memref<36x64xf32, #tpu.memory_space<vmem>>, vector<4x8xf32>
    tpu.vector_store %arg6[%c16_211, %c56_212], %118 {strides = array<i32>} : memref<36x64xf32, #tpu.memory_space<vmem>>, vector<4x8xf32>,
    %c0_213 = arith.constant 0 : index
    %c2_214 = arith.constant 2 : index
    %c0_215 = arith.constant 0 : index
    %c1_216 = arith.constant 1 : index
    %120 = vector.load %arg2[%c0_213, %c2_214, %c0_215, %c1_216] : memref<1x4x4x81xf32, #tpu.memory_space<vmem>>, vector<1x1x4x8xf32>
    %121 = vector.shape_cast %120 : vector<1x1x4x8xf32> to vector<4x8xf32>
    %c20 = arith.constant 20 : index
    %c0_217 = arith.constant 0 : index
    %122 = vector.load %arg6[%c20, %c0_217] : memref<36x64xf32, #tpu.memory_space<vmem>>, vector<4x8xf32>
    tpu.vector_store %arg6[%c20, %c0_217], %121 {strides = array<i32>} : memref<36x64xf32, #tpu.memory_space<vmem>>, vector<4x8xf32>,
    %c0_218 = arith.constant 0 : index
    %c2_219 = arith.constant 2 : index
    %c0_220 = arith.constant 0 : index
    %c10_221 = arith.constant 10 : index
    %123 = vector.load %arg2[%c0_218, %c2_219, %c0_220, %c10_221] : memref<1x4x4x81xf32, #tpu.memory_space<vmem>>, vector<1x1x4x8xf32>
    %124 = vector.shape_cast %123 : vector<1x1x4x8xf32> to vector<4x8xf32>
    %c20_222 = arith.constant 20 : index
    %c8_223 = arith.constant 8 : index
    %125 = vector.load %arg6[%c20_222, %c8_223] : memref<36x64xf32, #tpu.memory_space<vmem>>, vector<4x8xf32>
    tpu.vector_store %arg6[%c20_222, %c8_223], %124 {strides = array<i32>} : memref<36x64xf32, #tpu.memory_space<vmem>>, vector<4x8xf32>,
    %c0_224 = arith.constant 0 : index
    %c2_225 = arith.constant 2 : index
    %c0_226 = arith.constant 0 : index
    %c19_227 = arith.constant 19 : index
    %126 = vector.load %arg2[%c0_224, %c2_225, %c0_226, %c19_227] : memref<1x4x4x81xf32, #tpu.memory_space<vmem>>, vector<1x1x4x8xf32>
    %127 = vector.shape_cast %126 : vector<1x1x4x8xf32> to vector<4x8xf32>
    %c20_228 = arith.constant 20 : index
    %c16_229 = arith.constant 16 : index
    %128 = vector.load %arg6[%c20_228, %c16_229] : memref<36x64xf32, #tpu.memory_space<vmem>>, vector<4x8xf32>
    tpu.vector_store %arg6[%c20_228, %c16_229], %127 {strides = array<i32>} : memref<36x64xf32, #tpu.memory_space<vmem>>, vector<4x8xf32>,
    %c0_230 = arith.constant 0 : index
    %c2_231 = arith.constant 2 : index
    %c0_232 = arith.constant 0 : index
    %c28_233 = arith.constant 28 : index
    %129 = vector.load %arg2[%c0_230, %c2_231, %c0_232, %c28_233] : memref<1x4x4x81xf32, #tpu.memory_space<vmem>>, vector<1x1x4x8xf32>
    %130 = vector.shape_cast %129 : vector<1x1x4x8xf32> to vector<4x8xf32>
    %c20_234 = arith.constant 20 : index
    %c24_235 = arith.constant 24 : index
    %131 = vector.load %arg6[%c20_234, %c24_235] : memref<36x64xf32, #tpu.memory_space<vmem>>, vector<4x8xf32>
    tpu.vector_store %arg6[%c20_234, %c24_235], %130 {strides = array<i32>} : memref<36x64xf32, #tpu.memory_space<vmem>>, vector<4x8xf32>,
    %c0_236 = arith.constant 0 : index
    %c2_237 = arith.constant 2 : index
    %c0_238 = arith.constant 0 : index
    %c37_239 = arith.constant 37 : index
    %132 = vector.load %arg2[%c0_236, %c2_237, %c0_238, %c37_239] : memref<1x4x4x81xf32, #tpu.memory_space<vmem>>, vector<1x1x4x8xf32>
    %133 = vector.shape_cast %132 : vector<1x1x4x8xf32> to vector<4x8xf32>
    %c20_240 = arith.constant 20 : index
    %c32_241 = arith.constant 32 : index
    %134 = vector.load %arg6[%c20_240, %c32_241] : memref<36x64xf32, #tpu.memory_space<vmem>>, vector<4x8xf32>
    tpu.vector_store %arg6[%c20_240, %c32_241], %133 {strides = array<i32>} : memref<36x64xf32, #tpu.memory_space<vmem>>, vector<4x8xf32>,
    %c0_242 = arith.constant 0 : index
    %c2_243 = arith.constant 2 : index
    %c0_244 = arith.constant 0 : index
    %c46_245 = arith.constant 46 : index
    %135 = vector.load %arg2[%c0_242, %c2_243, %c0_244, %c46_245] : memref<1x4x4x81xf32, #tpu.memory_space<vmem>>, vector<1x1x4x8xf32>
    %136 = vector.shape_cast %135 : vector<1x1x4x8xf32> to vector<4x8xf32>
    %c20_246 = arith.constant 20 : index
    %c40_247 = arith.constant 40 : index
    %137 = vector.load %arg6[%c20_246, %c40_247] : memref<36x64xf32, #tpu.memory_space<vmem>>, vector<4x8xf32>
    tpu.vector_store %arg6[%c20_246, %c40_247], %136 {strides = array<i32>} : memref<36x64xf32, #tpu.memory_space<vmem>>, vector<4x8xf32>,
    %c0_248 = arith.constant 0 : index
    %c2_249 = arith.constant 2 : index
    %c0_250 = arith.constant 0 : index
    %c55_251 = arith.constant 55 : index
    %138 = vector.load %arg2[%c0_248, %c2_249, %c0_250, %c55_251] : memref<1x4x4x81xf32, #tpu.memory_space<vmem>>, vector<1x1x4x8xf32>
    %139 = vector.shape_cast %138 : vector<1x1x4x8xf32> to vector<4x8xf32>
    %c20_252 = arith.constant 20 : index
    %c48_253 = arith.constant 48 : index
    %140 = vector.load %arg6[%c20_252, %c48_253] : memref<36x64xf32, #tpu.memory_space<vmem>>, vector<4x8xf32>
    tpu.vector_store %arg6[%c20_252, %c48_253], %139 {strides = array<i32>} : memref<36x64xf32, #tpu.memory_space<vmem>>, vector<4x8xf32>,
    %c0_254 = arith.constant 0 : index
    %c2_255 = arith.constant 2 : index
    %c0_256 = arith.constant 0 : index
    %c64_257 = arith.constant 64 : index
    %141 = vector.load %arg2[%c0_254, %c2_255, %c0_256, %c64_257] : memref<1x4x4x81xf32, #tpu.memory_space<vmem>>, vector<1x1x4x8xf32>
    %142 = vector.shape_cast %141 : vector<1x1x4x8xf32> to vector<4x8xf32>
    %c20_258 = arith.constant 20 : index
    %c56_259 = arith.constant 56 : index
    %143 = vector.load %arg6[%c20_258, %c56_259] : memref<36x64xf32, #tpu.memory_space<vmem>>, vector<4x8xf32>
    tpu.vector_store %arg6[%c20_258, %c56_259], %142 {strides = array<i32>} : memref<36x64xf32, #tpu.memory_space<vmem>>, vector<4x8xf32>,
    %c0_260 = arith.constant 0 : index
    %c0_261 = arith.constant 0 : index
    %c0_262 = arith.constant 0 : index
    %c9_263 = arith.constant 9 : index
    %144 = vector.load %arg2[%c0_260, %c0_261, %c0_262, %c9_263] : memref<1x4x4x81xf32, #tpu.memory_space<vmem>>, vector<1x1x4x8xf32>
    %145 = vector.shape_cast %144 : vector<1x1x4x8xf32> to vector<4x8xf32>
    %c24_264 = arith.constant 24 : index
    %c0_265 = arith.constant 0 : index
    %146 = vector.load %arg6[%c24_264, %c0_265] : memref<36x64xf32, #tpu.memory_space<vmem>>, vector<4x8xf32>
    tpu.vector_store %arg6[%c24_264, %c0_265], %145 {strides = array<i32>} : memref<36x64xf32, #tpu.memory_space<vmem>>, vector<4x8xf32>,
    %c0_266 = arith.constant 0 : index
    %c0_267 = arith.constant 0 : index
    %c0_268 = arith.constant 0 : index
    %c18_269 = arith.constant 18 : index
    %147 = vector.load %arg2[%c0_266, %c0_267, %c0_268, %c18_269] : memref<1x4x4x81xf32, #tpu.memory_space<vmem>>, vector<1x1x4x8xf32>
    %148 = vector.shape_cast %147 : vector<1x1x4x8xf32> to vector<4x8xf32>
    %c24_270 = arith.constant 24 : index
    %c8_271 = arith.constant 8 : index
    %149 = vector.load %arg6[%c24_270, %c8_271] : memref<36x64xf32, #tpu.memory_space<vmem>>, vector<4x8xf32>
    tpu.vector_store %arg6[%c24_270, %c8_271], %148 {strides = array<i32>} : memref<36x64xf32, #tpu.memory_space<vmem>>, vector<4x8xf32>,
    %c0_272 = arith.constant 0 : index
    %c0_273 = arith.constant 0 : index
    %c0_274 = arith.constant 0 : index
    %c27_275 = arith.constant 27 : index
    %150 = vector.load %arg2[%c0_272, %c0_273, %c0_274, %c27_275] : memref<1x4x4x81xf32, #tpu.memory_space<vmem>>, vector<1x1x4x8xf32>
    %151 = vector.shape_cast %150 : vector<1x1x4x8xf32> to vector<4x8xf32>
    %c24_276 = arith.constant 24 : index
    %c16_277 = arith.constant 16 : index
    %152 = vector.load %arg6[%c24_276, %c16_277] : memref<36x64xf32, #tpu.memory_space<vmem>>, vector<4x8xf32>
    tpu.vector_store %arg6[%c24_276, %c16_277], %151 {strides = array<i32>} : memref<36x64xf32, #tpu.memory_space<vmem>>, vector<4x8xf32>,
    %c0_278 = arith.constant 0 : index
    %c0_279 = arith.constant 0 : index
    %c0_280 = arith.constant 0 : index
    %c36_281 = arith.constant 36 : index
    %153 = vector.load %arg2[%c0_278, %c0_279, %c0_280, %c36_281] : memref<1x4x4x81xf32, #tpu.memory_space<vmem>>, vector<1x1x4x8xf32>
    %154 = vector.shape_cast %153 : vector<1x1x4x8xf32> to vector<4x8xf32>
    %c24_282 = arith.constant 24 : index
    %c24_283 = arith.constant 24 : index
    %155 = vector.load %arg6[%c24_282, %c24_283] : memref<36x64xf32, #tpu.memory_space<vmem>>, vector<4x8xf32>
    tpu.vector_store %arg6[%c24_282, %c24_283], %154 {strides = array<i32>} : memref<36x64xf32, #tpu.memory_space<vmem>>, vector<4x8xf32>,
    %c0_284 = arith.constant 0 : index
    %c0_285 = arith.constant 0 : index
    %c0_286 = arith.constant 0 : index
    %c45_287 = arith.constant 45 : index
    %156 = vector.load %arg2[%c0_284, %c0_285, %c0_286, %c45_287] : memref<1x4x4x81xf32, #tpu.memory_space<vmem>>, vector<1x1x4x8xf32>
    %157 = vector.shape_cast %156 : vector<1x1x4x8xf32> to vector<4x8xf32>
    %c24_288 = arith.constant 24 : index
    %c32_289 = arith.constant 32 : index
    %158 = vector.load %arg6[%c24_288, %c32_289] : memref<36x64xf32, #tpu.memory_space<vmem>>, vector<4x8xf32>
    tpu.vector_store %arg6[%c24_288, %c32_289], %157 {strides = array<i32>} : memref<36x64xf32, #tpu.memory_space<vmem>>, vector<4x8xf32>,
    %c0_290 = arith.constant 0 : index
    %c0_291 = arith.constant 0 : index
    %c0_292 = arith.constant 0 : index
    %c54_293 = arith.constant 54 : index
    %159 = vector.load %arg2[%c0_290, %c0_291, %c0_292, %c54_293] : memref<1x4x4x81xf32, #tpu.memory_space<vmem>>, vector<1x1x4x8xf32>
    %160 = vector.shape_cast %159 : vector<1x1x4x8xf32> to vector<4x8xf32>
    %c24_294 = arith.constant 24 : index
    %c40_295 = arith.constant 40 : index
    %161 = vector.load %arg6[%c24_294, %c40_295] : memref<36x64xf32, #tpu.memory_space<vmem>>, vector<4x8xf32>
    tpu.vector_store %arg6[%c24_294, %c40_295], %160 {strides = array<i32>} : memref<36x64xf32, #tpu.memory_space<vmem>>, vector<4x8xf32>,
    %c0_296 = arith.constant 0 : index
    %c0_297 = arith.constant 0 : index
    %c0_298 = arith.constant 0 : index
    %c63_299 = arith.constant 63 : index
    %162 = vector.load %arg2[%c0_296, %c0_297, %c0_298, %c63_299] : memref<1x4x4x81xf32, #tpu.memory_space<vmem>>, vector<1x1x4x8xf32>
    %163 = vector.shape_cast %162 : vector<1x1x4x8xf32> to vector<4x8xf32>
    %c24_300 = arith.constant 24 : index
    %c48_301 = arith.constant 48 : index
    %164 = vector.load %arg6[%c24_300, %c48_301] : memref<36x64xf32, #tpu.memory_space<vmem>>, vector<4x8xf32>
    tpu.vector_store %arg6[%c24_300, %c48_301], %163 {strides = array<i32>} : memref<36x64xf32, #tpu.memory_space<vmem>>, vector<4x8xf32>,
    %c0_302 = arith.constant 0 : index
    %c0_303 = arith.constant 0 : index
    %c0_304 = arith.constant 0 : index
    %c72 = arith.constant 72 : index
    %165 = vector.load %arg2[%c0_302, %c0_303, %c0_304, %c72] : memref<1x4x4x81xf32, #tpu.memory_space<vmem>>, vector<1x1x4x8xf32>
    %166 = vector.shape_cast %165 : vector<1x1x4x8xf32> to vector<4x8xf32>
    %c24_305 = arith.constant 24 : index
    %c56_306 = arith.constant 56 : index
    %167 = vector.load %arg6[%c24_305, %c56_306] : memref<36x64xf32, #tpu.memory_space<vmem>>, vector<4x8xf32>
    tpu.vector_store %arg6[%c24_305, %c56_306], %166 {strides = array<i32>} : memref<36x64xf32, #tpu.memory_space<vmem>>, vector<4x8xf32>,
    %c0_307 = arith.constant 0 : index
    %c1_308 = arith.constant 1 : index
    %c0_309 = arith.constant 0 : index
    %c9_310 = arith.constant 9 : index
    %168 = vector.load %arg2[%c0_307, %c1_308, %c0_309, %c9_310] : memref<1x4x4x81xf32, #tpu.memory_space<vmem>>, vector<1x1x4x8xf32>
    %169 = vector.shape_cast %168 : vector<1x1x4x8xf32> to vector<4x8xf32>
    %c28_311 = arith.constant 28 : index
    %c0_312 = arith.constant 0 : index
    %170 = vector.load %arg6[%c28_311, %c0_312] : memref<36x64xf32, #tpu.memory_space<vmem>>, vector<4x8xf32>
    tpu.vector_store %arg6[%c28_311, %c0_312], %169 {strides = array<i32>} : memref<36x64xf32, #tpu.memory_space<vmem>>, vector<4x8xf32>,
    %c0_313 = arith.constant 0 : index
    %c1_314 = arith.constant 1 : index
    %c0_315 = arith.constant 0 : index
    %c18_316 = arith.constant 18 : index
    %171 = vector.load %arg2[%c0_313, %c1_314, %c0_315, %c18_316] : memref<1x4x4x81xf32, #tpu.memory_space<vmem>>, vector<1x1x4x8xf32>
    %172 = vector.shape_cast %171 : vector<1x1x4x8xf32> to vector<4x8xf32>
    %c28_317 = arith.constant 28 : index
    %c8_318 = arith.constant 8 : index
    %173 = vector.load %arg6[%c28_317, %c8_318] : memref<36x64xf32, #tpu.memory_space<vmem>>, vector<4x8xf32>
    tpu.vector_store %arg6[%c28_317, %c8_318], %172 {strides = array<i32>} : memref<36x64xf32, #tpu.memory_space<vmem>>, vector<4x8xf32>,
    %c0_319 = arith.constant 0 : index
    %c1_320 = arith.constant 1 : index
    %c0_321 = arith.constant 0 : index
    %c27_322 = arith.constant 27 : index
    %174 = vector.load %arg2[%c0_319, %c1_320, %c0_321, %c27_322] : memref<1x4x4x81xf32, #tpu.memory_space<vmem>>, vector<1x1x4x8xf32>
    %175 = vector.shape_cast %174 : vector<1x1x4x8xf32> to vector<4x8xf32>
    %c28_323 = arith.constant 28 : index
    %c16_324 = arith.constant 16 : index
    %176 = vector.load %arg6[%c28_323, %c16_324] : memref<36x64xf32, #tpu.memory_space<vmem>>, vector<4x8xf32>
    tpu.vector_store %arg6[%c28_323, %c16_324], %175 {strides = array<i32>} : memref<36x64xf32, #tpu.memory_space<vmem>>, vector<4x8xf32>,
    %c0_325 = arith.constant 0 : index
    %c1_326 = arith.constant 1 : index
    %c0_327 = arith.constant 0 : index
    %c36_328 = arith.constant 36 : index
    %177 = vector.load %arg2[%c0_325, %c1_326, %c0_327, %c36_328] : memref<1x4x4x81xf32, #tpu.memory_space<vmem>>, vector<1x1x4x8xf32>
    %178 = vector.shape_cast %177 : vector<1x1x4x8xf32> to vector<4x8xf32>
    %c28_329 = arith.constant 28 : index
    %c24_330 = arith.constant 24 : index
    %179 = vector.load %arg6[%c28_329, %c24_330] : memref<36x64xf32, #tpu.memory_space<vmem>>, vector<4x8xf32>
    tpu.vector_store %arg6[%c28_329, %c24_330], %178 {strides = array<i32>} : memref<36x64xf32, #tpu.memory_space<vmem>>, vector<4x8xf32>,
    %c0_331 = arith.constant 0 : index
    %c1_332 = arith.constant 1 : index
    %c0_333 = arith.constant 0 : index
    %c45_334 = arith.constant 45 : index
    %180 = vector.load %arg2[%c0_331, %c1_332, %c0_333, %c45_334] : memref<1x4x4x81xf32, #tpu.memory_space<vmem>>, vector<1x1x4x8xf32>
    %181 = vector.shape_cast %180 : vector<1x1x4x8xf32> to vector<4x8xf32>
    %c28_335 = arith.constant 28 : index
    %c32_336 = arith.constant 32 : index
    %182 = vector.load %arg6[%c28_335, %c32_336] : memref<36x64xf32, #tpu.memory_space<vmem>>, vector<4x8xf32>
    tpu.vector_store %arg6[%c28_335, %c32_336], %181 {strides = array<i32>} : memref<36x64xf32, #tpu.memory_space<vmem>>, vector<4x8xf32>,
    %c0_337 = arith.constant 0 : index
    %c1_338 = arith.constant 1 : index
    %c0_339 = arith.constant 0 : index
    %c54_340 = arith.constant 54 : index
    %183 = vector.load %arg2[%c0_337, %c1_338, %c0_339, %c54_340] : memref<1x4x4x81xf32, #tpu.memory_space<vmem>>, vector<1x1x4x8xf32>
    %184 = vector.shape_cast %183 : vector<1x1x4x8xf32> to vector<4x8xf32>
    %c28_341 = arith.constant 28 : index
    %c40_342 = arith.constant 40 : index
    %185 = vector.load %arg6[%c28_341, %c40_342] : memref<36x64xf32, #tpu.memory_space<vmem>>, vector<4x8xf32>
    tpu.vector_store %arg6[%c28_341, %c40_342], %184 {strides = array<i32>} : memref<36x64xf32, #tpu.memory_space<vmem>>, vector<4x8xf32>,
    %c0_343 = arith.constant 0 : index
    %c1_344 = arith.constant 1 : index
    %c0_345 = arith.constant 0 : index
    %c63_346 = arith.constant 63 : index
    %186 = vector.load %arg2[%c0_343, %c1_344, %c0_345, %c63_346] : memref<1x4x4x81xf32, #tpu.memory_space<vmem>>, vector<1x1x4x8xf32>
    %187 = vector.shape_cast %186 : vector<1x1x4x8xf32> to vector<4x8xf32>
    %c28_347 = arith.constant 28 : index
    %c48_348 = arith.constant 48 : index
    %188 = vector.load %arg6[%c28_347, %c48_348] : memref<36x64xf32, #tpu.memory_space<vmem>>, vector<4x8xf32>
    tpu.vector_store %arg6[%c28_347, %c48_348], %187 {strides = array<i32>} : memref<36x64xf32, #tpu.memory_space<vmem>>, vector<4x8xf32>,
    %c0_349 = arith.constant 0 : index
    %c1_350 = arith.constant 1 : index
    %c0_351 = arith.constant 0 : index
    %c72_352 = arith.constant 72 : index
    %189 = vector.load %arg2[%c0_349, %c1_350, %c0_351, %c72_352] : memref<1x4x4x81xf32, #tpu.memory_space<vmem>>, vector<1x1x4x8xf32>
    %190 = vector.shape_cast %189 : vector<1x1x4x8xf32> to vector<4x8xf32>
    %c28_353 = arith.constant 28 : index
    %c56_354 = arith.constant 56 : index
    %191 = vector.load %arg6[%c28_353, %c56_354] : memref<36x64xf32, #tpu.memory_space<vmem>>, vector<4x8xf32>
    tpu.vector_store %arg6[%c28_353, %c56_354], %190 {strides = array<i32>} : memref<36x64xf32, #tpu.memory_space<vmem>>, vector<4x8xf32>,
    %c0_355 = arith.constant 0 : index
    %c0_356 = arith.constant 0 : index
    %c0_357 = arith.constant 0 : index
    %c10_358 = arith.constant 10 : index
    %192 = vector.load %arg2[%c0_355, %c0_356, %c0_357, %c10_358] : memref<1x4x4x81xf32, #tpu.memory_space<vmem>>, vector<1x1x4x8xf32>
    %193 = vector.shape_cast %192 : vector<1x1x4x8xf32> to vector<4x8xf32>
    %c32_359 = arith.constant 32 : index
    %c0_360 = arith.constant 0 : index
    %194 = vector.load %arg6[%c32_359, %c0_360] : memref<36x64xf32, #tpu.memory_space<vmem>>, vector<4x8xf32>
    tpu.vector_store %arg6[%c32_359, %c0_360], %193 {strides = array<i32>} : memref<36x64xf32, #tpu.memory_space<vmem>>, vector<4x8xf32>,
    %c0_361 = arith.constant 0 : index
    %c0_362 = arith.constant 0 : index
    %c0_363 = arith.constant 0 : index
    %c19_364 = arith.constant 19 : index
    %195 = vector.load %arg2[%c0_361, %c0_362, %c0_363, %c19_364] : memref<1x4x4x81xf32, #tpu.memory_space<vmem>>, vector<1x1x4x8xf32>
    %196 = vector.shape_cast %195 : vector<1x1x4x8xf32> to vector<4x8xf32>
    %c32_365 = arith.constant 32 : index
    %c8_366 = arith.constant 8 : index
    %197 = vector.load %arg6[%c32_365, %c8_366] : memref<36x64xf32, #tpu.memory_space<vmem>>, vector<4x8xf32>
    tpu.vector_store %arg6[%c32_365, %c8_366], %196 {strides = array<i32>} : memref<36x64xf32, #tpu.memory_space<vmem>>, vector<4x8xf32>,
    %c0_367 = arith.constant 0 : index
    %c0_368 = arith.constant 0 : index
    %c0_369 = arith.constant 0 : index
    %c28_370 = arith.constant 28 : index
    %198 = vector.load %arg2[%c0_367, %c0_368, %c0_369, %c28_370] : memref<1x4x4x81xf32, #tpu.memory_space<vmem>>, vector<1x1x4x8xf32>
    %199 = vector.shape_cast %198 : vector<1x1x4x8xf32> to vector<4x8xf32>
    %c32_371 = arith.constant 32 : index
    %c16_372 = arith.constant 16 : index
    %200 = vector.load %arg6[%c32_371, %c16_372] : memref<36x64xf32, #tpu.memory_space<vmem>>, vector<4x8xf32>
    tpu.vector_store %arg6[%c32_371, %c16_372], %199 {strides = array<i32>} : memref<36x64xf32, #tpu.memory_space<vmem>>, vector<4x8xf32>,
    %c0_373 = arith.constant 0 : index
    %c0_374 = arith.constant 0 : index
    %c0_375 = arith.constant 0 : index
    %c37_376 = arith.constant 37 : index
    %201 = vector.load %arg2[%c0_373, %c0_374, %c0_375, %c37_376] : memref<1x4x4x81xf32, #tpu.memory_space<vmem>>, vector<1x1x4x8xf32>
    %202 = vector.shape_cast %201 : vector<1x1x4x8xf32> to vector<4x8xf32>
    %c32_377 = arith.constant 32 : index
    %c24_378 = arith.constant 24 : index
    %203 = vector.load %arg6[%c32_377, %c24_378] : memref<36x64xf32, #tpu.memory_space<vmem>>, vector<4x8xf32>
    tpu.vector_store %arg6[%c32_377, %c24_378], %202 {strides = array<i32>} : memref<36x64xf32, #tpu.memory_space<vmem>>, vector<4x8xf32>,
    %c0_379 = arith.constant 0 : index
    %c0_380 = arith.constant 0 : index
    %c0_381 = arith.constant 0 : index
    %c46_382 = arith.constant 46 : index
    %204 = vector.load %arg2[%c0_379, %c0_380, %c0_381, %c46_382] : memref<1x4x4x81xf32, #tpu.memory_space<vmem>>, vector<1x1x4x8xf32>
    %205 = vector.shape_cast %204 : vector<1x1x4x8xf32> to vector<4x8xf32>
    %c32_383 = arith.constant 32 : index
    %c32_384 = arith.constant 32 : index
    %206 = vector.load %arg6[%c32_383, %c32_384] : memref<36x64xf32, #tpu.memory_space<vmem>>, vector<4x8xf32>
    tpu.vector_store %arg6[%c32_383, %c32_384], %205 {strides = array<i32>} : memref<36x64xf32, #tpu.memory_space<vmem>>, vector<4x8xf32>,
    %c0_385 = arith.constant 0 : index
    %c0_386 = arith.constant 0 : index
    %c0_387 = arith.constant 0 : index
    %c55_388 = arith.constant 55 : index
    %207 = vector.load %arg2[%c0_385, %c0_386, %c0_387, %c55_388] : memref<1x4x4x81xf32, #tpu.memory_space<vmem>>, vector<1x1x4x8xf32>
    %208 = vector.shape_cast %207 : vector<1x1x4x8xf32> to vector<4x8xf32>
    %c32_389 = arith.constant 32 : index
    %c40_390 = arith.constant 40 : index
    %209 = vector.load %arg6[%c32_389, %c40_390] : memref<36x64xf32, #tpu.memory_space<vmem>>, vector<4x8xf32>
    tpu.vector_store %arg6[%c32_389, %c40_390], %208 {strides = array<i32>} : memref<36x64xf32, #tpu.memory_space<vmem>>, vector<4x8xf32>,
    %c0_391 = arith.constant 0 : index
    %c0_392 = arith.constant 0 : index
    %c0_393 = arith.constant 0 : index
    %c64_394 = arith.constant 64 : index
    %210 = vector.load %arg2[%c0_391, %c0_392, %c0_393, %c64_394] : memref<1x4x4x81xf32, #tpu.memory_space<vmem>>, vector<1x1x4x8xf32>
    %211 = vector.shape_cast %210 : vector<1x1x4x8xf32> to vector<4x8xf32>
    %c32_395 = arith.constant 32 : index
    %c48_396 = arith.constant 48 : index
    %212 = vector.load %arg6[%c32_395, %c48_396] : memref<36x64xf32, #tpu.memory_space<vmem>>, vector<4x8xf32>
    tpu.vector_store %arg6[%c32_395, %c48_396], %211 {strides = array<i32>} : memref<36x64xf32, #tpu.memory_space<vmem>>, vector<4x8xf32>,
    %c0_397 = arith.constant 0 : index
    %c0_398 = arith.constant 0 : index
    %c0_399 = arith.constant 0 : index
    %c73 = arith.constant 73 : index
    %213 = vector.load %arg2[%c0_397, %c0_398, %c0_399, %c73] : memref<1x4x4x81xf32, #tpu.memory_space<vmem>>, vector<1x1x4x8xf32>
    %214 = vector.shape_cast %213 : vector<1x1x4x8xf32> to vector<4x8xf32>
    %c32_400 = arith.constant 32 : index
    %c56_401 = arith.constant 56 : index
    %215 = vector.load %arg6[%c32_400, %c56_401] : memref<36x64xf32, #tpu.memory_space<vmem>>, vector<4x8xf32>
    tpu.vector_store %arg6[%c32_400, %c56_401], %214 {strides = array<i32>} : memref<36x64xf32, #tpu.memory_space<vmem>>, vector<4x8xf32>,
    %c0_402 = arith.constant 0 : index
    %c0_403 = arith.constant 0 : index
    %216 = vector.load %arg3[%c0_402, %c0_403] : memref<4x36xf32, #tpu.memory_space<vmem>>, vector<4x36xf32>
    %c0_404 = arith.constant 0 : index
    %c0_405 = arith.constant 0 : index
    %217 = vector.load %arg6[%c0_404, %c0_405] : memref<36x64xf32, #tpu.memory_space<vmem>>, vector<36x64xf32>
    %cst = arith.constant dense<0.000000e+00> : vector<4x64xf32>
    %218 = tpu.matmul %216, %217, %cst {dimension_numbers = #tpu.dot_dimension_numbers<[1], [0], [0], [1], [0, 0, 1, 1], [], []>} : vector<4x36xf32>, vector<36x64xf32>, vector<4x64xf32> -> vector<4x64xf32>
    %c0_406 = arith.constant 0 : index
    %c0_407 = arith.constant 0 : index
    %219 = vector.load %arg4[%c0_406, %c0_407] : memref<4x1xf32, #tpu.memory_space<vmem>>, vector<4x1xf32>
    %220 = vector.broadcast %219 : vector<4x1xf32> to vector<4x64xf32>
    %221 = arith.addf %218, %220 : vector<4x64xf32>
    %cst_408 = arith.constant 0.000000e+00 : f32
    %222 = vector.broadcast %cst_408 : f32 to vector<4x64xf32>
    %223 = arith.maximumf %221, %222 : vector<4x64xf32>
    %c0_409 = arith.constant 0 : index
    %c0_410 = arith.constant 0 : index
    %c0_411 = arith.constant 0 : index
    %224 = vector.load %arg5[%c0_409, %c0_410, %c0_411] : memref<1x8x64xf32, #tpu.memory_space<vmem>>, vector<1x4x64xf32>
    %225 = vector.shape_cast %224 : vector<1x4x64xf32> to vector<4x64xf32>
    %226 = vector.shape_cast %223 : vector<4x64xf32> to vector<1x4x64xf32>
    tpu.vector_store %arg5[%c0_409, %c0_410, %c0_411], %226 {strides = array<i32>} : memref<1x8x64xf32, #tpu.memory_space<vmem>>, vector<1x4x64xf32>,
    %c16_412 = arith.constant 16 : index
    %c0_413 = arith.constant 0 : index
    %227 = vector.load %arg6[%c16_412, %c0_413] : memref<36x64xf32, #tpu.memory_space<vmem>>, vector<4x64xf32>
    %c20_414 = arith.constant 20 : index
    %c0_415 = arith.constant 0 : index
    %228 = vector.load %arg6[%c20_414, %c0_415] : memref<36x64xf32, #tpu.memory_space<vmem>>, vector<4x64xf32>
    %229 = arith.maximumf %227, %228 : vector<4x64xf32>
    %c28_416 = arith.constant 28 : index
    %c0_417 = arith.constant 0 : index
    %230 = vector.load %arg6[%c28_416, %c0_417] : memref<36x64xf32, #tpu.memory_space<vmem>>, vector<4x64xf32>
    %231 = arith.maximumf %229, %230 : vector<4x64xf32>
    %c32_418 = arith.constant 32 : index
    %c0_419 = arith.constant 0 : index
    %232 = vector.load %arg6[%c32_418, %c0_419] : memref<36x64xf32, #tpu.memory_space<vmem>>, vector<4x64xf32>
    %233 = arith.maximumf %231, %232 : vector<4x64xf32>
    %cst_420 = arith.constant 0.000000e+00 : f32
    %234 = vector.broadcast %cst_420 : f32 to vector<4x64xf32>
    %235 = arith.maximumf %233, %234 : vector<4x64xf32>
    %c0_421 = arith.constant 0 : index
    %c4_422 = arith.constant 4 : index
    %c0_423 = arith.constant 0 : index
    %236 = vector.load %arg5[%c0_421, %c4_422, %c0_423] : memref<1x8x64xf32, #tpu.memory_space<vmem>>, vector<1x4x64xf32>
    %237 = vector.shape_cast %236 : vector<1x4x64xf32> to vector<4x64xf32>
    %238 = vector.shape_cast %235 : vector<4x64xf32> to vector<1x4x64xf32>
    tpu.vector_store %arg5[%c0_421, %c4_422, %c0_423], %238 {strides = array<i32>} : memref<1x8x64xf32, #tpu.memory_space<vmem>>, vector<1x4x64xf32>,
    return
  }
  func.func @transform_0(%arg0: i32, %arg1: i32) -> (i32, i32, i32, i32) {
    %c0_i32 = arith.constant 0 : i32
    %c0_i32_0 = arith.constant 0 : i32
    %c0_i32_1 = arith.constant 0 : i32
    %c0_i32_2 = arith.constant 0 : i32
    return %arg0, %c0_i32, %c0_i32_0, %c0_i32_1 : i32, i32, i32, i32
  }
  func.func @transform_1(%arg0: i32, %arg1: i32) -> (i32, i32) {
    %c0_i32 = arith.constant 0 : i32
    %c0_i32_0 = arith.constant 0 : i32
    %c0_i32_1 = arith.constant 0 : i32
    return %c0_i32, %c0_i32_0 : i32, i32
  }
  func.func @transform_2(%arg0: i32, %arg1: i32) -> (i32, i32) {
    %c0_i32 = arith.constant 0 : i32
    %c0_i32_0 = arith.constant 0 : i32
    %c0_i32_1 = arith.constant 0 : i32
    return %c0_i32, %c0_i32_0 : i32, i32
  }
  func.func @transform_3(%arg0: i32, %arg1: i32) -> (i32, i32, i32) {
    %c0_i32 = arith.constant 0 : i32
    %c0_i32_0 = arith.constant 0 : i32
    return %arg0, %c0_i32, %arg1 : i32, i32, i32
  }
}

</mosaic_0001>

<bundles_post_ra>
// kernel: tpu_custom_call.1
= control target key start
LH: loop header
LB: loop body
LE: loop exit
PB: predicated region body
PF: predicated region fallthrough
CT: control target
= control target key end

     0   :  { %8 = vsyncpa [#allocation4], 0  ;;  %s1548_s0 = inlined_call_operand.hbm [shape: f32[2,4,4,81], index: 0, kind: input, shape index: {}]   ;;  %s1549_s1 = inlined_call_operand.vmem [shape: f32[4,36], index: 1, kind: input, shape index: {}]   ;;  %s1550_s2 = inlined_call_operand.vmem [shape: f32[4,1], index: 2, kind: input, shape index: {}]   ;;  %s1551_s3 = inlined_call_operand.hbm [shape: f32[2,8,64], index: 3, kind: output, shape index: {}]  }
   0x1   :  { %10 = vsyncpa [#allocation4 + $0x1], 0 }
   0x2   :  { %11 = vsyncpa [#allocation5], 0 }
   0x3   :  { %13 = vsyncpa [#allocation5 + $0x1], 0  ;;  %s1153_s12 = smov 0   ;;  %s1155_s13 = smov 0  }
   0x4   :  { %s1157_s14 = smov 0   ;;  %s1159_s15 = smov 0  }
   0x5   :  { %s1161_s16 = smov 0   ;;  %s1163_s17 = smov 0  }
   0x6 LB: > { %s826_s18 = sadd.s32 4294967295, %s1106_s17   ;;  %s827_s19 = sadd.s32 4294967294, %s1106_s17   ;;  %s1106_s17 = sphi %s1163_s17, %s19_s17   ;;  %s1102_s16 = sphi %s1161_s16, %s1566_s16   ;;  %s1098_s15 = sphi %s1159_s15, %s1565_s15   ;;  %s1094_s14 = sphi %s1157_s14, %s1564_s14   ;;  %s1090_s13 = sphi %s1155_s13, %s1563_s13   ;;  %s1086_s12 = sphi %s1153_s12, %s1562_s12  }
   0x7   : > { %s31_s20 = sadd.s32 1, %s1102_s16  ;;  %s38_s21 = sadd.s32 1, %s1094_s14 }
   0x8   : > { %p33_p0 = scmp.ge.s32.totalorder %s31_s20, 2  ;;  %p45_p1 = scmp.ne.s32.totalorder %s1094_s14, %s1090_s13 }
   0x9   : > { %p46_p2 = scmp.eq.s32.totalorder %s1106_s17, 0  ;;  %p51_p3 = scmp.ne.s32.totalorder %s1090_s13, %s1086_s12 }
   0xa   : > { %s1568_s20 = smov (%p33_p0, %s31_s20), 0  ;;  %p52_p5 = scmp.eq.s32.totalorder %s826_s18, 0 }
   0xb   : > { %p1194_p4 = por %p46_p2, %p45_p1  ;;  %s35_s23 = ssub.s32 %s1102_s16, %s1568_s20 }
   0xc   : > { %p119_p6 = scmp.eq.s32.totalorder %s826_s18, 1  ;;  %p36_p7 = scmp.eq.s32.totalorder %s35_s23, 0 }
   0xd   : > { %p1200_p8 = por %p52_p5, %p51_p3  ;;  %p125_p10 = scmp.eq.s32.totalorder %s827_s19, 1 }
   0xe   : > { %p1204_p9 = por %p119_p6, %p45_p1  ;;  %p920_p13 = scmp.lt.s32.totalorder %s1106_s17, 2 }
   0xf   : > { %s1209_s26 = scalar_select %p36_p7, %s1094_s14, %s38_s21  }
  0x10   : > { %s1555_s25 = scalar_select %p1204_p9, 1, 0 }
  0x11   : > { %p1211_p11 = por %p125_p10, %p51_p3  ;;  %s151_s28 = sand.u32 1, %s1094_s14  }
  0x12   : > { %s830_s29 = sshll.u32 %s151_s28, 4  ;;  %s882_s30 = sshll.u32 %s1102_s16, 8 }
  0x13   : > { %s1556_s27 = scalar_select %p1211_p11, 1, 0 }
  0x14   : > { %s1222_s6 = scalar_lea.hbm %s1548_s0, %s882_s30  ;;  %s155_s7 = scalar_lea.vmem [#allocation3], %s830_s29 }
  0x15   : > { %s162_s8 = sshll.u32 %s155_s7, 4  ;;  %p1228_p0 = pnand %p920_p13, %p1194_p4  ;;  %s1224_s8 = int_to_ptr.vmem [resolvable:$true] %s162_s8 }
  0x16   : > { %s1233_s10 = scalar_lea.sflag [#allocation4], %s151_s28  ;;  %s994_s11 = scalar_lea.hbm %s1222_s6, 256 }
  0x17   : > { %p995_p2 = scmp.ne.s32.totalorder %s1222_s6, %s994_s11  ;;  %p996_p3 = pneg %p1228_p0 }
  0x18   : > { %s999_s21 = scalar_lea.hbm %s1548_s0, 512  ;;  %p1000_p4 = scmp.lt.u32.totalorder %s1222_s6, %s1548_s0 }
  0x19   : > { %p997_p5 = pnand %p996_p3, %p995_p2  ;;  %p1001_p7 = scmp.lt.u32.totalorder %s999_s21, %s994_s11 }
  0x1a   : > { %p1003_p13 = scmp.lt.u32.totalorder %s994_s11, %s1222_s6 }
  0x1b   : > { %p998_p6 = pneg %p997_p5  ;;  %p1002_p10 = por %p1001_p7, %p1000_p4 }
  0x1d   : > { %p1004_p12 = por %p1003_p13, %p1002_p10 }
  0x1f   : > { %p1005_p1 = pnand %p1004_p12, %p998_p6 }
  0x21   : > { %1008 = shalt.err (!%p1005_p1)
}
  0x22   : > { %s1009_s28 = scalar_lea.vmem %s1224_s8, 256  ;;  %s1108_s29 = smov [#allocation3]  }
  0x23   : > { %p1010_p2 = scmp.ne.s32.totalorder %s1224_s8, %s1009_s28  ;;  %s1014_s30 = sshll.u32 %s1108_s29, 4  ;;  %s1015_s30 = int_to_ptr.vmem [resolvable:$false] %s1014_s30 }
  0x24   : > { %s1016_s4 = scalar_lea.vmem %s1015_s30, 512  ;;  %p1017_p9 = scmp.lt.s32.totalorder %s1224_s8, %s1015_s30 }
  0x25   : > { %p1012_p5 = pnand %p1010_p2, %p996_p3  ;;  %p1018_p4 = scmp.lt.s32.totalorder %s1016_s4, %s1009_s28 }
  0x27   : > { %p1013_p11 = pneg %p1012_p5  ;;  %p1019_p7 = por %p1018_p4, %p1017_p9 }
  0x29   : > { %p1020_p10 = pnand %p1019_p7, %p1013_p11 }
  0x2b   : > { %1023 = shalt.err (!%p1020_p10)
}
  0x2c   : > { %s1109_s5 = smov 64   ;;  %s1110_s7 = smov 4  }
  0x2d   : > { %915 = dma.hbm_to_vmem [thread:$0]  (!%p1228_p0), %s1222_s6, 256, %s1224_s8, %s1233_s10, %s1109_s5, %s1109_s5, %s1110_s7  }
  0x2e   : > { %p170_p12 = scmp.lt.s32.totalorder %s1106_s17, 3  ;;  %p1558_p1 = scmp.ge.s32.totalorder %s1106_s17, 1 }
  0x30   : > { %p171_p3 = pnand %p1558_p1, %p170_p12 }
  0x31   : > { %s1265_s11 = sand.u32 (!%p171_p3), 1, %s1090_s13  }
  0x32   : > { %174 = sbr.rel (%p171_p3) target bundleno = 546 (0x222), region = 32  ;;  %s834_s18 = sshll.u32 (!%p171_p3), %s1265_s11, 4 }
  0x33   : > { %s177_s19 = scalar_lea.sflag (!%p171_p3), [#allocation4], %s1265_s11  ;;  %s1269_s21 = scalar_lea.vmem (!%p171_p3), [#allocation3], %s834_s18 }
  0x39   : > { %1077 = dma.done.wait (%p1200_p8), %s177_s19, 256  }
  0x3a   : > { %1079 = vsyncadd (%p1200_p8), %s177_s19, 4294967040  ;;  %v300_v0 = vld [vmem:[%s1269_s21] sm:$0xf]  ;;  %v837_v1 = vld [vmem:[%s1269_s21 + $0x4] sm:$0xf]  ;;  %s1111_s6 = smov 127  }
  0x3b   : > { %302 = vrot.lane.b32.xlu0 %v300_v0, %s1111_s6  ;;  %260 = vrot.lane.b32.xlu1 %v837_v1, %s1111_s6  ;;  %v306_v2 = vld [vmem:[%s1269_s21] sm:$0xf]  ;;  %s1112_s24 = smov 126   ;;  %v845_v5 = vld [vmem:[%s1269_s21 + $0x8] sm:$0xf]  ;;  %s1113_s8 = smov 125  }
  0x3c   : > { %v206_v3 = vld [vmem:[%s1269_s21] sm:$0xf]  ;;  %v838_v7 = vld [vmem:[%s1269_s21 + $0x4] sm:$0xf]  ;;  %v846_v9 = vld [vmem:[%s1269_s21 + $0x8] sm:$0xf] }
  0x3d   : > { %v213_v4 = vld [vmem:[%s1269_s21] sm:$0xf]  ;;  %v839_v11 = vld [vmem:[%s1269_s21 + $0x4] sm:$0xf]  ;;  %vm204_vm0 = vcmask 60416   ;;  %s1114_s9 = smov 124  }
  0x3e   : > { %v312_v6 = vld [vmem:[%s1269_s21] sm:$0xf]  ;;  %v836_v12 = vld [vmem:[%s1269_s21 + $0x4] sm:$0xf]  ;;  %v847_v14 = vld [vmem:[%s1269_s21 + $0x8] sm:$0xf] }
  0x3f   : > { %308 = vrot.lane.b32.xlu1 %v306_v2, %s1112_s24  ;;  %208 = vrot.lane.b32.xlu0 %v206_v3, %s1111_s6  ;;  %v220_v8 = vld [vmem:[%s1269_s21] sm:$0xf]  ;;  %257 = vst.msk [vmem:[#allocation2 + $0x4] sm:$0xf] %vm204_vm0, %v836_v12  ;;  %v844_v16 = vld [vmem:[%s1269_s21 + $0x8] sm:$0xf] }
  0x40   : > { %v318_v10 = vld [vmem:[%s1269_s21] sm:$0xf]  ;;  %350 = vst.msk [vmem:[#allocation2 + $0xc] sm:$0xf] %vm204_vm0, %v844_v16  ;;  %v840_v18 = vld [vmem:[%s1269_s21 + $0x4] sm:$0xf] }
  0x41   : > { %v227_v13 = vld [vmem:[%s1269_s21] sm:$0xf]  ;;  %s1115_s10 = smov 123   ;;  %v860_v19 = vld [vmem:[%s1269_s21 + $0x8] sm:$0xf]  ;;  %s1116_s22 = smov 119  }
  0x42   : > { %v203_v15 = vld [vmem:[%s1269_s21] sm:$0xf]  ;;  %v848_v20 = vld [vmem:[%s1269_s21 + $0x8] sm:$0xf]  ;;  %v868_v21 = vld [vmem:[%s1269_s21 + $0x4] sm:$0xf] }
  0x43   : > { %215 = vrot.lane.b32.xlu1 %v213_v4, %s1112_s24  ;;  %353 = vrot.lane.b32.xlu0 %v845_v5, %s1111_s6  ;;  %205 = vst.msk [vmem:[#allocation2] sm:$0xf] %vm204_vm0, %v203_v15  ;;  %v324_v17 = vld [vmem:[%s1269_s21] sm:$0xf]  ;;  %v852_v23 = vld [vmem:[%s1269_s21 + $0xc] sm:$0xf] }
  0x44   : > { %v486_v22 = vld [vmem:[%s1269_s21] sm:$0xf]  ;;  %395 = vst.msk [vmem:[#allocation2 + $0x10] sm:$0xf] %vm204_vm0, %v852_v23  ;;  %v841_v24 = vld [vmem:[%s1269_s21 + $0x4] sm:$0xf] }
  0x45   : > { %v234_v25 = vld [vmem:[%s1269_s21] sm:$0xf]  ;;  %v849_v26 = vld [vmem:[%s1269_s21 + $0x8] sm:$0xf]  ;;  %s1117_s23 = smov 122   ;;  %s1118_s28 = smov 118  }
  0x46   : > { %v330_v27 = vld [vmem:[%s1269_s21] sm:$0xf]  ;;  %v861_v28 = vld [vmem:[%s1269_s21 + $0x8] sm:$0xf]  ;;  %v853_v29 = vld [vmem:[%s1269_s21 + $0xc] sm:$0xf] }
  0x47   : > { %314 = vrot.lane.b32.xlu1 %v312_v6, %s1113_s8  ;;  %266 = vrot.lane.b32.xlu0 %v838_v7, %s1112_s24  ;;  %v869_v30 = vld [vmem:[%s1269_s21 + $0x4] sm:$0xf]  ;;  %v492_v31 = vld [vmem:[%s1269_s21] sm:$0xf]  ;;  %s1119_s29 = smov 121   ;;  %s1120_s30 = smov 117  }
  0x48   : > { %v842_v32 = vld [vmem:[%s1269_s21 + $0x4] sm:$0xf]  ;;  %v241_v33 = vld [vmem:[%s1269_s21] sm:$0xf]  ;;  %v850_v34 = vld [vmem:[%s1269_s21 + $0x8] sm:$0xf] }
  0x49   : > { %v336_v35 = vld [vmem:[%s1269_s21] sm:$0xf]  ;;  %v862_v36 = vld [vmem:[%s1269_s21 + $0x8] sm:$0xf]  ;;  %v854_v37 = vld [vmem:[%s1269_s21 + $0xc] sm:$0xf] }
  0x4a   : > { %v870_v38 = vld [vmem:[%s1269_s21 + $0x4] sm:$0xf]  ;;  %v498_v39 = vld [vmem:[%s1269_s21] sm:$0xf]  ;;  %v851_v42 = vld [vmem:[%s1269_s21 + $0x8] sm:$0xf] }
  0x4b   : > { %222 = vrot.lane.b32.xlu1 %v220_v8, %s1113_s8  ;;  %359 = vrot.lane.b32.xlu0 %v846_v9, %s1112_s24  ;;  %v843_v40 = vld [vmem:[%s1269_s21 + $0x4] sm:$0xf]  ;;  %v248_v41 = vld [vmem:[%s1269_s21] sm:$0xf]  ;;  %v1121_v44 = vmov 0.0|0.0   ;;  %s1122_s4 = smov 120  }
  0x4c   : > { %v342_v43 = vld [vmem:[%s1269_s21] sm:$0xf]  ;;  %902 = vmatprep.subr.bf16.mxu0 %v1121_v44  ;;  %v855_v45 = vld [vmem:[%s1269_s21 + $0xc] sm:$0xf]  ;;  %v863_v46 = vld [vmem:[%s1269_s21 + $0x8] sm:$0xf] }
  0x4d   : > { %v504_v47 = vld [vmem:[%s1269_s21] sm:$0xf]  ;;  %v871_v48 = vld [vmem:[%s1269_s21 + $0x4] sm:$0xf]  ;;  %s1123_s5 = smov 116   ;;  %s1124_s7 = smov 115  }
  0x4e   : > { %v856_v49 = vld [vmem:[%s1269_s21 + $0xc] sm:$0xf]  ;;  %v864_v50 = vld [vmem:[%s1269_s21 + $0x8] sm:$0xf]  ;;  %v510_v51 = vld [vmem:[%s1269_s21] sm:$0xf] }
  0x4f   : > { %320 = vrot.lane.b32.xlu1 %v318_v10, %s1114_s9  ;;  %272 = vrot.lane.b32.xlu0 %v839_v11, %s1113_s8  ;;  %v872_v52 = vld [vmem:[%s1269_s21 + $0x4] sm:$0xf]  ;;  %v857_v53 = vld [vmem:[%s1269_s21 + $0xc] sm:$0xf]  ;;  %s1125_s18 = smov 114   ;;  %s1126_s19 = smov 113  }
  0x50   : > { %v865_v54 = vld [vmem:[%s1269_s21 + $0x8] sm:$0xf]  ;;  %v516_v55 = vld [vmem:[%s1269_s21] sm:$0xf]  ;;  %v873_v56 = vld [vmem:[%s1269_s21 + $0x4] sm:$0xf] }
  0x51   : > { %v858_v57 = vld [vmem:[%s1269_s21 + $0xc] sm:$0xf]  ;;  %v866_v58 = vld [vmem:[%s1269_s21 + $0x8] sm:$0xf]  ;;  %v522_v59 = vld [vmem:[%s1269_s21] sm:$0xf] }
  0x52   : > { %v874_v60 = vld [vmem:[%s1269_s21 + $0x4] sm:$0xf]  ;;  %v582_v61 = vld [vmem:[%s1269_s21] sm:$0xf]  ;;  %v859_v62 = vld [vmem:[%s1269_s21 + $0xc] sm:$0xf] }
  0x53   : > { %229 = vrot.lane.b32.xlu1 %v227_v13, %s1114_s9  ;;  %365 = vrot.lane.b32.xlu0 %v847_v14, %s1113_s8  ;;  %vm211_vm1 = vcmask 126016   ;;  %v867_v63 = vld [vmem:[%s1269_s21 + $0x8] sm:$0xf]  ;;  %v528_v0 = vld [vmem:[%s1269_s21] sm:$0xf]  ;;  %vm218_vm2 = vcmask 191616  }
  0x54   : > { %v875_v3 = vld [vmem:[%s1269_s21 + $0x4] sm:$0xf]  ;;  %v588_v4 = vld [vmem:[%s1269_s21] sm:$0xf]  ;;  %vm225_vm3 = vcmask 257216   ;;  %vm1128_vm4 = vmmov 0  }
  0x55   : > { %v594_v7 = vld [vmem:[%s1269_s21] sm:$0xf]  ;;  %vm232_vm5 = vcmask 322816   ;;  %vm239_vm6 = vcmask 388416   ;;  %vm246_vm7 = vcmask 454016   ;;  %vm253_vm8 = vcmask 519616  }
  0x56   : > { %v600_v8 = vld [vmem:[%s1269_s21] sm:$0xf]  ;;  %vm646_vm9 = vcmask 1043456   ;;  %vm642_vm10 = vcmask 293888   ;;  %vm721_vm11 = vcmask 519168   ;;  %p1559_p9 = scmp.ne.s32.totalorder %s1555_s25, 0 }
  0x57   : > { %326 = vrot.lane.b32.xlu1 %v324_v17, %s1115_s10  ;;  %278 = vrot.lane.b32.xlu0 %v840_v18, %s1114_s9  ;;  %v606_v11 = vld [vmem:[%s1269_s21] sm:$0xf]  ;;  %v1129_v17 = vmov 0.0  }
  0x58   : > { %v612_v12 = vld [vmem:[%s1269_s21] sm:$0xf]  ;;  %899 = vmatprep.mubr.msk.f32.mxu0 %vm1128_vm4, %v1129_v17 }
  0x59   : > { %v618_v15 = vld [vmem:[%s1269_s21] sm:$0xf] }
  0x5a   : > { %v624_v16 = vld [vmem:[%s1269_s21] sm:$0xf] }
  0x5b   : > { %440 = vrot.lane.b32.xlu1 %v860_v19, %s1111_s6  ;;  %371 = vrot.lane.b32.xlu0 %v848_v20, %s1114_s9  ;;  %v1130_v20 = vmov 0  }
  0x5c   : > { %993 = vset.pattern.permute.xlu0 %v1130_v20 }
  0x5f   : > { %536 = vrot.lane.b32.xlu1 %v868_v21, %s1116_s22  ;;  %488 = vrot.lane.b32.xlu0 %v486_v22, %s1116_s22  ;;  %v636_v21 = vld [vmem:[%s1550_s2] sm:$0xf]  ;;  %s835_s22 = sshll.u32 %s1265_s11, 3 }
  0x63   : > { %284 = vrot.lane.b32.xlu1 %v841_v24, %s1115_s10  ;;  %236 = vrot.lane.b32.xlu0 %v234_v25, %s1115_s10 }
  0x67   : > { %377 = vrot.lane.b32.xlu1 %v849_v26, %s1115_s10  ;;  %332 = vrot.lane.b32.xlu0 %v330_v27, %s1117_s23 }
  0x6b   : > { %446 = vrot.lane.b32.xlu1 %v861_v28, %s1112_s24  ;;  %398 = vrot.lane.b32.xlu0 %v853_v29, %s1111_s6  ;;  %s1127_s6 = smov 112  }
  0x6f   : > { %542 = vrot.lane.b32.xlu1 %v869_v30, %s1118_s28  ;;  %494 = vrot.lane.b32.xlu0 %v492_v31, %s1118_s28 }
  0x73   : > { %290 = vrot.lane.b32.xlu1 %v842_v32, %s1117_s23  ;;  %243 = vrot.lane.b32.xlu0 %v241_v33, %s1117_s23 }
  0x77   : > { %383 = vrot.lane.b32.xlu1 %v850_v34, %s1117_s23  ;;  %338 = vrot.lane.b32.xlu0 %v336_v35, %s1119_s29 }
  0x7b   : > { %452 = vrot.lane.b32.xlu1 %v862_v36, %s1113_s8  ;;  %404 = vrot.lane.b32.xlu0 %v854_v37, %s1112_s24  ;;  %s1131_s24 = smov 111  }
  0x7f   : > { %548 = vrot.lane.b32.xlu1 %v870_v38, %s1120_s30  ;;  %500 = vrot.lane.b32.xlu0 %v498_v39, %s1120_s30 }
  0x83   : > { %296 = vrot.lane.b32.xlu1 %v843_v40, %s1119_s29  ;;  %250 = vrot.lane.b32.xlu0 %v248_v41, %s1119_s29 }
  0x87   : > { %389 = vrot.lane.b32.xlu1 %v851_v42, %s1119_s29  ;;  %344 = vrot.lane.b32.xlu0 %v342_v43, %s1122_s4 }
  0x8b   : > { %410 = vrot.lane.b32.xlu0 %v855_v45, %s1113_s8  ;;  %458 = vrot.lane.b32.xlu1 %v863_v46, %s1114_s9 }
  0x8f   : > { %506 = vrot.lane.b32.xlu0 %v504_v47, %s1123_s5  ;;  %554 = vrot.lane.b32.xlu1 %v871_v48, %s1123_s5 }
  0x93   : > { %416 = vrot.lane.b32.xlu0 %v856_v49, %s1114_s9  ;;  %464 = vrot.lane.b32.xlu1 %v864_v50, %s1115_s10 }
  0x97   : > { %512 = vrot.lane.b32.xlu0 %v510_v51, %s1124_s7  ;;  %560 = vrot.lane.b32.xlu1 %v872_v52, %s1124_s7 }
  0x9b   : > { %422 = vrot.lane.b32.xlu0 %v857_v53, %s1115_s10  ;;  %470 = vrot.lane.b32.xlu1 %v865_v54, %s1117_s23 }
  0x9f   : > { %518 = vrot.lane.b32.xlu0 %v516_v55, %s1125_s18  ;;  %566 = vrot.lane.b32.xlu1 %v873_v56, %s1125_s18 }
  0xa3   : > { %428 = vrot.lane.b32.xlu0 %v858_v57, %s1117_s23  ;;  %476 = vrot.lane.b32.xlu1 %v866_v58, %s1119_s29  ;;  %s202_s23 = scalar_lea.vmem [#allocation6], %s835_s22 }
  0xa7   : > { %524 = vrot.lane.b32.xlu0 %v522_v59, %s1126_s19  ;;  %572 = vrot.lane.b32.xlu1 %v874_v60, %s1126_s19 }
  0xab   : > { %584 = vrot.lane.b32.xlu0 %v582_v61, %s1118_s28  ;;  %434 = vrot.lane.b32.xlu1 %v859_v62, %s1119_s29  ;;  %s879_s28 = sshll.u32 %s1098_s15, 7  ;;  %s747_s29 = sshll.u32 %s202_s23, 4  ;;  %s1501_s29 = int_to_ptr.vmem [resolvable:$true] %s747_s29 }
  0xac   : > { %s1132_s15 = smov [#allocation6]  }
  0xad   : > { %v303_v1 = vpop.permute.xlu0 %302  ;;  %v261_v2 = vpop.permute.xlu1 %260 }
  0xae   : > { %305 = vst.msk [vmem:[#allocation2 + $0x8] sm:$0xf] %vm204_vm0, %v303_v1 }
  0xaf   : > { %263 = vst.msk [vmem:[#allocation2 + $0x4] sm:$0xf] %vm211_vm1, %v261_v2  ;;  %482 = vrot.lane.b32.xlu0 %v867_v63, %s1122_s4  ;;  %530 = vrot.lane.b32.xlu1 %v528_v0, %s1127_s6 }
  0xb1   : > { %v309_v5 = vpop.permute.xlu1 %308  ;;  %v209_v6 = vpop.permute.xlu0 %208 }
  0xb2   : > { %311 = vst.msk [vmem:[#allocation2 + $0x8] sm:$0xf] %vm211_vm1, %v309_v5  ;;  %212 = vst.msk [vmem:[#allocation2] sm:$0xf] %vm211_vm1, %v209_v6 }
  0xb3   : > { %578 = vrot.lane.b32.xlu0 %v875_v3, %s1127_s6  ;;  %590 = vrot.lane.b32.xlu1 %v588_v4, %s1120_s30 }
  0xb5   : > { %v216_v9 = vpop.permute.xlu1 %215  ;;  %v354_v10 = vpop.permute.xlu0 %353 }
  0xb6   : > { %219 = vst.msk [vmem:[#allocation2] sm:$0xf] %vm218_vm2, %v216_v9 }
  0xb7   : > { %356 = vst.msk [vmem:[#allocation2 + $0xc] sm:$0xf] %vm211_vm1, %v354_v10  ;;  %596 = vrot.lane.b32.xlu0 %v594_v7, %s1123_s5  ;;  %602 = vrot.lane.b32.xlu1 %v600_v8, %s1124_s7  ;;  %s1499_s5 = scalar_lea.hbm %s1551_s3, %s879_s28  ;;  %s733_s7 = scalar_lea.sflag [#allocation5], %s1265_s11 }
  0xb9   : > { %v315_v13 = vpop.permute.xlu1 %314  ;;  %v267_v14 = vpop.permute.xlu0 %266 }
  0xba   : > { %317 = vst.msk [vmem:[#allocation2 + $0x8] sm:$0xf] %vm218_vm2, %v315_v13  ;;  %269 = vst.msk [vmem:[#allocation2 + $0x4] sm:$0xf] %vm218_vm2, %v267_v14 }
  0xbb   : > { %608 = vrot.lane.b32.xlu0 %v606_v11, %s1125_s18  ;;  %614 = vrot.lane.b32.xlu1 %v612_v12, %s1126_s19  ;;  %s1024_s18 = scalar_lea.vmem %s1501_s29, 128  ;;  %s1028_s19 = sshll.u32 %s1132_s15, 4  ;;  %s1029_s19 = int_to_ptr.vmem [resolvable:$false] %s1028_s19 }
  0xbc   : > { %p1025_p8 = scmp.ne.s32.totalorder %s1501_s29, %s1024_s18  ;;  %p1031_p6 = scmp.lt.s32.totalorder %s1501_s29, %s1029_s19 }
  0xbd   : > { %v223_v18 = vpop.permute.xlu1 %222  ;;  %v360_v19 = vpop.permute.xlu0 %359 }
  0xbe   : > { %226 = vst.msk [vmem:[#allocation2] sm:$0xf] %vm225_vm3, %v223_v18  ;;  %p1026_p11 = pnand %p1025_p8, %p1559_p9 }
  0xbf   : > { %362 = vst.msk [vmem:[#allocation2 + $0xc] sm:$0xf] %vm218_vm2, %v360_v19  ;;  %620 = vrot.lane.b32.xlu0 %v618_v15, %s1127_s6  ;;  %626 = vrot.lane.b32.xlu1 %v624_v16, %s1131_s24  ;;  %s1030_s6 = scalar_lea.vmem %s1029_s19, 256 }
  0xc0   : > { %p1027_p0 = pneg %p1026_p11  ;;  %p1032_p13 = scmp.lt.s32.totalorder %s1030_s6, %s1024_s18 }
  0xc1   : > { %v321_v22 = vpop.permute.xlu1 %320  ;;  %v273_v23 = vpop.permute.xlu0 %272 }
  0xc2   : > { %323 = vst.msk [vmem:[#allocation2 + $0x8] sm:$0xf] %vm225_vm3, %v321_v22  ;;  %275 = vst.msk [vmem:[#allocation2 + $0x4] sm:$0xf] %vm225_vm3, %v273_v23  ;;  %p1033_p2 = por %p1032_p13, %p1031_p6 }
  0xc3   : > { %639 = vperm.xlu0 %993, %v636_v21  }
  0xc4   : > { %p1034_p5 = pnand %p1033_p2, %p1027_p0 }
  0xc5   : > { %v230_v24 = vpop.permute.xlu1 %229  ;;  %v366_v25 = vpop.permute.xlu0 %365 }
  0xc6   : > { %233 = vst.msk [vmem:[#allocation2] sm:$0xf] %vm232_vm5, %v230_v24 }
  0xc7   : > { %368 = vst.msk [vmem:[#allocation2 + $0xc] sm:$0xf] %vm225_vm3, %v366_v25 }
  0xc9   : > { %v327_v26 = vpop.permute.xlu1 %326  ;;  %v279_v27 = vpop.permute.xlu0 %278 }
  0xca   : > { %329 = vst.msk [vmem:[#allocation2 + $0x8] sm:$0xf] %vm232_vm5, %v327_v26  ;;  %281 = vst.msk [vmem:[#allocation2 + $0x4] sm:$0xf] %vm232_vm5, %v279_v27  ;;  %v630_v27 = vld [vmem:[%s1549_s1] sm:$0xf] }
  0xcd   : > { %v441_v28 = vpop.permute.xlu1 %440  ;;  %v372_v29 = vpop.permute.xlu0 %371 }
  0xce   : > { %443 = vst.msk [vmem:[#allocation2 + $0x14] sm:$0xf] %vm204_vm0, %v441_v28 }
  0xcf   : > { %374 = vst.msk [vmem:[#allocation2 + $0xc] sm:$0xf] %vm232_vm5, %v372_v29 }
  0xd1   : > { %v537_v30 = vpop.permute.xlu1 %536  ;;  %v489_v31 = vpop.permute.xlu0 %488 }
  0xd2   : > { %539 = vst.msk [vmem:[#allocation2 + $0x1c] sm:$0xf] %vm204_vm0, %v537_v30  ;;  %491 = vst.msk [vmem:[#allocation2 + $0x18] sm:$0xf] %vm204_vm0, %v489_v31 }
  0xd5   : > { %v285_v32 = vpop.permute.xlu1 %284  ;;  %v237_v33 = vpop.permute.xlu0 %236 }
  0xd6   : > { %287 = vst.msk [vmem:[#allocation2 + $0x4] sm:$0xf] %vm239_vm6, %v285_v32  ;;  %240 = vst.msk [vmem:[#allocation2] sm:$0xf] %vm239_vm6, %v237_v33 }
  0xd9   : > { %v378_v34 = vpop.permute.xlu1 %377  ;;  %v333_v35 = vpop.permute.xlu0 %332 }
  0xda   : > { %380 = vst.msk [vmem:[#allocation2 + $0xc] sm:$0xf] %vm239_vm6, %v378_v34  ;;  %335 = vst.msk [vmem:[#allocation2 + $0x8] sm:$0xf] %vm239_vm6, %v333_v35 }
  0xdd   : > { %v447_v36 = vpop.permute.xlu1 %446  ;;  %v399_v37 = vpop.permute.xlu0 %398 }
  0xde   : > { %449 = vst.msk [vmem:[#allocation2 + $0x14] sm:$0xf] %vm211_vm1, %v447_v36  ;;  %401 = vst.msk [vmem:[#allocation2 + $0x10] sm:$0xf] %vm211_vm1, %v399_v37 }
  0xe1   : > { %v543_v38 = vpop.permute.xlu1 %542  ;;  %v495_v39 = vpop.permute.xlu0 %494 }
  0xe2   : > { %545 = vst.msk [vmem:[#allocation2 + $0x1c] sm:$0xf] %vm211_vm1, %v543_v38  ;;  %497 = vst.msk [vmem:[#allocation2 + $0x18] sm:$0xf] %vm211_vm1, %v495_v39 }
  0xe5   : > { %v291_v40 = vpop.permute.xlu1 %290  ;;  %v244_v41 = vpop.permute.xlu0 %243 }
  0xe6   : > { %293 = vst.msk [vmem:[#allocation2 + $0x4] sm:$0xf] %vm246_vm7, %v291_v40  ;;  %247 = vst.msk [vmem:[#allocation2] sm:$0xf] %vm246_vm7, %v244_v41 }
  0xe9   : > { %v384_v42 = vpop.permute.xlu1 %383  ;;  %v339_v43 = vpop.permute.xlu0 %338 }
  0xea   : > { %386 = vst.msk [vmem:[#allocation2 + $0xc] sm:$0xf] %vm246_vm7, %v384_v42  ;;  %341 = vst.msk [vmem:[#allocation2 + $0x8] sm:$0xf] %vm246_vm7, %v339_v43 }
  0xed   : > { %v453_v45 = vpop.permute.xlu1 %452  ;;  %v405_v46 = vpop.permute.xlu0 %404 }
  0xee   : > { %455 = vst.msk [vmem:[#allocation2 + $0x14] sm:$0xf] %vm218_vm2, %v453_v45  ;;  %407 = vst.msk [vmem:[#allocation2 + $0x10] sm:$0xf] %vm218_vm2, %v405_v46 }
  0xf1   : > { %v549_v47 = vpop.permute.xlu1 %548  ;;  %v501_v48 = vpop.permute.xlu0 %500 }
  0xf2   : > { %551 = vst.msk [vmem:[#allocation2 + $0x1c] sm:$0xf] %vm218_vm2, %v549_v47  ;;  %503 = vst.msk [vmem:[#allocation2 + $0x18] sm:$0xf] %vm218_vm2, %v501_v48 }
  0xf5   : > { %v297_v49 = vpop.permute.xlu1 %296  ;;  %v251_v50 = vpop.permute.xlu0 %250 }
  0xf6   : > { %299 = vst.msk [vmem:[#allocation2 + $0x4] sm:$0xf] %vm253_vm8, %v297_v49  ;;  %254 = vst.msk [vmem:[#allocation2] sm:$0xf] %vm253_vm8, %v251_v50 }
  0xf9   : > { %v390_v51 = vpop.permute.xlu1 %389  ;;  %v345_v52 = vpop.permute.xlu0 %344 }
  0xfa   : > { %392 = vst.msk [vmem:[#allocation2 + $0xc] sm:$0xf] %vm253_vm8, %v390_v51  ;;  %347 = vst.msk [vmem:[#allocation2 + $0x8] sm:$0xf] %vm253_vm8, %v345_v52 }
  0xfd   : > { %v411_v53 = vpop.permute.xlu0 %410  ;;  %v459_v54 = vpop.permute.xlu1 %458  ;;  %v631_v57 = vld [vmem:[#allocation2] sm:$0xff] }
  0xfe   : > { %413 = vst.msk [vmem:[#allocation2 + $0x10] sm:$0xf] %vm225_vm3, %v411_v53  ;;  %461 = vst.msk [vmem:[#allocation2 + $0x14] sm:$0xf] %vm225_vm3, %v459_v54 }
 0x101   : > { %v507_v55 = vpop.permute.xlu0 %506  ;;  %v555_v56 = vpop.permute.xlu1 %554  ;;  %v632_v58 = vld [vmem:[#allocation2 + $0x8] sm:$0xff] }
 0x102   : > { %509 = vst.msk [vmem:[#allocation2 + $0x18] sm:$0xf] %vm225_vm3, %v507_v55  ;;  %557 = vst.msk [vmem:[#allocation2 + $0x1c] sm:$0xf] %vm225_vm3, %v555_v56  ;;  %v903_v59 = vpack.c.bf16 %v632_v58, %v631_v57 }
 0x104   : > { %904 = vmatpush3.bf16.msra.mxu0 %v903_v59 }
 0x105   : > { %v417_v60 = vpop.permute.xlu0 %416  ;;  %v465_v61 = vpop.permute.xlu1 %464  ;;  %905 = vmatprep.subr.bf16.mxu0 %v1121_v44 }
 0x106   : > { %419 = vst.msk [vmem:[#allocation2 + $0x10] sm:$0xf] %vm232_vm5, %v417_v60  ;;  %467 = vst.msk [vmem:[#allocation2 + $0x14] sm:$0xf] %vm232_vm5, %v465_v61 }
 0x109   : > { %v513_v62 = vpop.permute.xlu0 %512  ;;  %v561_v63 = vpop.permute.xlu1 %560 }
 0x10a   : > { %515 = vst.msk [vmem:[#allocation2 + $0x18] sm:$0xf] %vm232_vm5, %v513_v62  ;;  %563 = vst.msk [vmem:[#allocation2 + $0x1c] sm:$0xf] %vm232_vm5, %v561_v63 }
 0x10d   : > { %v423_v0 = vpop.permute.xlu0 %422  ;;  %v471_v1 = vpop.permute.xlu1 %470 }
 0x10e   : > { %425 = vst.msk [vmem:[#allocation2 + $0x10] sm:$0xf] %vm239_vm6, %v423_v0  ;;  %473 = vst.msk [vmem:[#allocation2 + $0x14] sm:$0xf] %vm239_vm6, %v471_v1 }
 0x111   : > { %v519_v2 = vpop.permute.xlu0 %518  ;;  %v567_v3 = vpop.permute.xlu1 %566 }
 0x112   : > { %521 = vst.msk [vmem:[#allocation2 + $0x18] sm:$0xf] %vm239_vm6, %v519_v2  ;;  %569 = vst.msk [vmem:[#allocation2 + $0x1c] sm:$0xf] %vm239_vm6, %v567_v3 }
 0x115   : > { %v429_v44 = vpop.permute.xlu0 %428  ;;  %v477_v4 = vpop.permute.xlu1 %476 }
 0x116   : > { %431 = vst.msk [vmem:[#allocation2 + $0x10] sm:$0xf] %vm246_vm7, %v429_v44  ;;  %479 = vst.msk [vmem:[#allocation2 + $0x14] sm:$0xf] %vm246_vm7, %v477_v4 }
 0x119   : > { %v525_v5 = vpop.permute.xlu0 %524  ;;  %v573_v6 = vpop.permute.xlu1 %572 }
 0x11a   : > { %527 = vst.msk [vmem:[#allocation2 + $0x18] sm:$0xf] %vm246_vm7, %v525_v5  ;;  %575 = vst.msk [vmem:[#allocation2 + $0x1c] sm:$0xf] %vm246_vm7, %v573_v6 }
 0x11d   : > { %v585_v7 = vpop.permute.xlu0 %584  ;;  %v435_v8 = vpop.permute.xlu1 %434 }
 0x11e   : > { %587 = vst.msk [vmem:[#allocation2 + $0x20] sm:$0xf] %vm204_vm0, %v585_v7 }
 0x11f   : > { %437 = vst.msk [vmem:[#allocation2 + $0x10] sm:$0xf] %vm253_vm8, %v435_v8 }
 0x121   : > { %v483_v9 = vpop.permute.xlu0 %482  ;;  %v531_v10 = vpop.permute.xlu1 %530 }
 0x122   : > { %485 = vst.msk [vmem:[#allocation2 + $0x14] sm:$0xf] %vm253_vm8, %v483_v9  ;;  %533 = vst.msk [vmem:[#allocation2 + $0x18] sm:$0xf] %vm253_vm8, %v531_v10 }
 0x125   : > { %v579_v11 = vpop.permute.xlu0 %578  ;;  %v591_v12 = vpop.permute.xlu1 %590 }
 0x126   : > { %581 = vst.msk [vmem:[#allocation2 + $0x1c] sm:$0xf] %vm253_vm8, %v579_v11  ;;  %v723_v24 = vld [vmem:[#allocation2 + $0x10] sm:$0xf] }
 0x127   : > { %593 = vst.msk [vmem:[#allocation2 + $0x20] sm:$0xf] %vm211_vm1, %v591_v12 }
 0x129   : > { %v597_v13 = vpop.permute.xlu0 %596  ;;  %v603_v14 = vpop.permute.xlu1 %602  ;;  %v633_v18 = vld [vmem:[#allocation2 + $0x10] sm:$0xff] }
 0x12a   : > { %599 = vst.msk [vmem:[#allocation2 + $0x20] sm:$0xf] %vm218_vm2, %v597_v13  ;;  %v724_v23 = vld [vmem:[#allocation2 + $0x14] sm:$0xf] }
 0x12b   : > { %605 = vst.msk [vmem:[#allocation2 + $0x20] sm:$0xf] %vm225_vm3, %v603_v14  ;;  %v725_v26 = vmax.f32 %v723_v24, %v724_v23 }
 0x12d   : > { %v609_v15 = vpop.permute.xlu0 %608  ;;  %v615_v16 = vpop.permute.xlu1 %614  ;;  %v634_v19 = vld [vmem:[#allocation2 + $0x18] sm:$0xff] }
 0x12e   : > { %611 = vst.msk [vmem:[#allocation2 + $0x20] sm:$0xf] %vm232_vm5, %v609_v15  ;;  %v906_v20 = vpack.c.bf16 %v634_v19, %v633_v18  ;;  %v726_v25 = vld [vmem:[#allocation2 + $0x1c] sm:$0xf] }
 0x12f   : > { %617 = vst.msk [vmem:[#allocation2 + $0x20] sm:$0xf] %vm239_vm6, %v615_v16  ;;  %v727_v28 = vmax.f32 %v725_v26, %v726_v25 }
 0x130   : > { %907 = vmatpush3.bf16.msra.mxu0 %v906_v20 }
 0x131   : > { %v621_v21 = vpop.permute.xlu0 %620  ;;  %v627_v22 = vpop.permute.xlu1 %626  ;;  %897 = vmatprep.subr.mxu0 %v1129_v17 }
 0x132   : > { %623 = vst.msk [vmem:[#allocation2 + $0x20] sm:$0xf] %vm246_vm7, %v621_v21 }
 0x133   : > { %629 = vst.msk [vmem:[#allocation2 + $0x20] sm:$0xf] %vm253_vm8, %v627_v22 }
 0x13a   : > { %v635_v29 = vld [vmem:[#allocation2 + $0x20] sm:$0xf] }
 0x13b   : > { %v728_v30 = vld [vmem:[#allocation2 + $0x20] sm:$0xf]  ;;  %898 = vmatpush3.msk.msra.mxu0 %vm646_vm9, %v635_v29 }
 0x13c   : > { %v729_v17 = vmax.f32 %v727_v28, %v728_v30  ;;  %900 = vmatmul.mubr.msk.f32.vlgmr.msra.gmra.mrb[0].mxu0 %vm642_vm10, %v630_v27 }
 0x13e   : > { %v730_v31 = vmax.f32 %v729_v17, 0.0 }
 0x140   : > { %731 = vst.msk [vmem:[%s202_s23 + $0x4] sm:$0xf] %vm721_vm11, %v730_v31 }
 0x142   : > { %v640_v32 = vpop.permute.xlu0 %639 }
 0x20f   : > { %v716_v33 = vpop.f32.mrb[0].mxu0 }
 0x210   : > { %v717_v34 = vadd.f32 %v716_v33, %v640_v32  ;;  %v901_v35 = vpop.f32.mrb[1].mxu0 }
 0x212   : > { %v720_v36 = vmax.f32 %v717_v34, 0.0 }
 0x214   : > { %722 = vst.msk [vmem:[%s202_s23] sm:$0xf] %vm721_vm11, %v720_v36 }
 0x215   : > { %1037 = shalt.err (!%p1034_p5)
}
 0x216   : > { %s1038_s11 = scalar_lea.hbm %s1499_s5, 128  ;;  %s1042_s9 = scalar_lea.hbm %s1551_s3, 256 }
 0x217   : > { %p1039_p4 = scmp.ne.s32.totalorder %s1499_s5, %s1038_s11  ;;  %p1043_p12 = scmp.lt.u32.totalorder %s1499_s5, %s1551_s3 }
 0x218   : > { %p1044_p1 = scmp.lt.u32.totalorder %s1042_s9, %s1038_s11  ;;  %p1046_p8 = scmp.lt.u32.totalorder %s1038_s11, %s1499_s5 }
 0x219   : > { %p1040_p7 = pnand %p1039_p4, %p1559_p9 }
 0x21a   : > { %p1045_p3 = por %p1044_p1, %p1043_p12 }
 0x21b   : > { %p1041_p10 = pneg %p1040_p7 }
 0x21c   : > { %p1047_p11 = por %p1046_p8, %p1045_p3 }
 0x21e   : > { %p1048_p0 = pnand %p1047_p11, %p1041_p10 }
 0x220   : > { %1051 = shalt.err (!%p1048_p0)
}
 0x221   : > { %910 = dma.vmem_to_hbm [thread:$0]  (%p1559_p9), %s1501_s29, 128, %s1499_s5, %s733_s7  }
 0x222 PF: > { %s759_s22 = sand.u32 1, %s1086_s12   ;;  %p1560_p6 = scmp.ne.s32.totalorder %s1556_s27, 0 }
 0x223   : > { %p1561_p13 = scmp.ge.s32.totalorder %s1106_s17, 2  ;;  %s760_s23 = scalar_lea.sflag [#allocation5], %s759_s22 }
 0x225   : > { %p917_p2 = pnand %p1561_p13, %p1560_p6 }
 0x227   : > { %1081 = dma.done.wait (!%p917_p2), %s760_s23, 128  }
 0x228   : > { %1083 = vsyncadd (!%p917_p2), %s760_s23, 4294967168  ;;  %s19_s17 = sadd.s32 1, %s1106_s17   ;;  %s1562_s12 = smov %s1090_s13 }
 0x229   : > { %p16_p5 = scmp.ge.s32.totalorder %s19_s17, 4   ;;  %s1563_s13 = smov %s1094_s14 }
 0x22a   : > { %s1564_s14 = smov %s1209_s26  ;;  %s1565_s15 = smov %s1102_s16 }
 0x22b   : > { %s1566_s16 = smov %s1568_s20  ;;  %18 = sbr.rel (!%p16_p5) target bundleno = 6 (0x6), region = 80 }
 0x232   :  { %765 = vsyncpa [#allocation4], 1 }
 0x233   :  { %767 = vsyncpa [#allocation4 + $0x1], 1 }
 0x234   :  { %768 = vsyncpa [#allocation5], 1 }
 0x235   :  { %770 = vsyncpa [#allocation5 + $0x1], 1 }

</bundles_post_ra>
